<compile_context>
chip_gen: v7x
topology: tpu7x:2x2x1
jax: 0.10.0
libtpu: 0.0.40
codegen_flags: <defaults>
</compile_context>

<pallas_src>
import jax
import jax.numpy as jnp
from jax.experimental import pallas as pl
from jax.experimental.pallas import tpu as pltpu

IN_CHANNELS = 1024
OUT_CHANNELS = 6
HIDDEN = (512, 256, 128)
SUBLANE = 16          # bf16-friendly sublane multiple for the batch tile
LANE = 128            # lane width for the padded output


def _round_up(v, m):
    return ((v + m - 1) // m) * m


def _dn_kernel(x_ref, w0_ref, b0_ref, w1_ref, b1_ref, w2_ref, b2_ref,
               w3_ref, b3_ref, o_ref):
    """Fused 4-layer MLP: relu(...relu(relu(x@W0+b0)@W1+b1)...@W3+b3).

    x arrives f32 straight from featNet and is cast to bf16 here (no extra
    HBM pass in the wrapper).  All matmuls accumulate in f32 on the MXU;
    bias-add and ReLU run in f32; activations drop back to bf16 only for the
    next dot.
    """
    x = x_ref[...].astype(jnp.bfloat16)
    h = jnp.dot(x, w0_ref[...], preferred_element_type=jnp.float32)
    h = jnp.maximum(h + b0_ref[...], 0.0)
    h = jnp.dot(h.astype(jnp.bfloat16), w1_ref[...],
                preferred_element_type=jnp.float32)
    h = jnp.maximum(h + b1_ref[...], 0.0)
    h = jnp.dot(h.astype(jnp.bfloat16), w2_ref[...],
                preferred_element_type=jnp.float32)
    h = jnp.maximum(h + b2_ref[...], 0.0)
    h = jnp.dot(h.astype(jnp.bfloat16), w3_ref[...],
                preferred_element_type=jnp.float32)
    h = jnp.maximum(h + b3_ref[...], 0.0)          # final ReLU: matches DN.forward
    o_ref[...] = h.astype(o_ref.dtype)


def init_dn_params(key, in_channels=IN_CHANNELS, out_channels=OUT_CHANNELS):
    """Deterministic init matching DN.__init__: xavier_uniform_ weights,
    default PyTorch Linear bias init (uniform +/- 1/sqrt(fan_in))."""
    dims = (in_channels,) + HIDDEN + (out_channels,)
    params = []
    for i in range(4):
        fan_in, fan_out = dims[i], dims[i + 1]
        key, kw, kb = jax.random.split(key, 3)
        bound_w = (6.0 / (fan_in + fan_out)) ** 0.5          # xavier_uniform_
        w = jax.random.uniform(kw, (fan_in, fan_out), jnp.float32,
                               -bound_w, bound_w)
        bound_b = 1.0 / (fan_in ** 0.5)                      # nn.Linear default bias
        b = jax.random.uniform(kb, (1, fan_out), jnp.float32,
                               -bound_b, bound_b)
        params.append((w, b))
    return params


def prepare_dn_params(params):
    """One-time prep: cast weights to bf16 (kept resident, NOT re-cast per
    call) and zero-pad fc3 to a lane-dense 128-wide slab so the kernel's final
    store is an unmasked vst.  Biases stay f32 (added to the f32 accumulator).
    """
    (w0, b0), (w1, b1), (w2, b2), (w3, b3) = params
    out_dim = w3.shape[1]
    out_pad = _round_up(out_dim, LANE)
    w3p = jnp.pad(w3, ((0, 0), (0, out_pad - out_dim)))
    b3p = jnp.pad(b3, ((0, 0), (0, out_pad - out_dim)))
    weights = tuple(w.astype(jnp.bfloat16) for w in (w0, w1, w2, w3p))
    biases = (b0, b1, b2, b3p)
    return {"weights": weights, "biases": biases, "out_dim": out_dim}


def dn_forward(x, prepared, *, tile_b=256, out_dtype=jnp.float32):
    """Run the fused DN MLP as a single Pallas kernel, tiled over batch.

    The batch tile is capped at ceil(B/2) (rounded to 16) so any batch >= 32
    produces at least 2 grid steps: DMA/compute overlap on all generations and
    both-TensorCore sharding on v7x via dimension_semantics=("parallel",).
    """
    B, F = x.shape
    ws, bs, out_dim = prepared["weights"], prepared["biases"], prepared["out_dim"]
    out_pad = ws[3].shape[1]

    # Batch tile: multiple of 16 (bf16 sublane packing), at most tile_b, and
    # at most half the batch (rounded up) so the grid has >= 2 steps for any
    # non-trivial B.
    half = _round_up(max(1, (B + 1) // 2), SUBLANE)
    tb = max(SUBLANE, min(tile_b, half))
    tb = (tb // SUBLANE) * SUBLANE
    B_pad = _round_up(B, tb)

    # Only pad when B is ragged w.r.t. the tile; no dtype cast here (in-kernel).
    x_in = x if B_pad == B else jnp.pad(x, ((0, B_pad - B), (0, 0)))
    grid = (B_pad // tb,)

    def const_spec(shape):
        nd = len(shape)
        # Constant block index: the weight/bias DMA only happens on step 0.
        return pl.BlockSpec(shape, lambda i, _nd=nd: (0,) * _nd)

    # Advisory cost hint so XLA schedules/overlaps this short kernel sensibly.
    dims = (F,) + tuple(w.shape[1] for w in ws)
    flops = 2 * B_pad * sum(dims[i] * dims[i + 1] for i in range(4))
    bytes_accessed = int(
        x_in.size * x_in.dtype.itemsize
        + sum(int(w.size) * 2 for w in ws)              # bf16 weights
        + sum(int(b.size) * 4 for b in bs)              # f32 biases
        + B_pad * out_pad * jnp.dtype(out_dtype).itemsize)

    # Real VMEM footprint is a few MiB; 16 MiB covers tiles up to 256 rows
    # (and keeps v5e's scoped default satisfied) without starving v7x.
    vmem_limit = (16 if tb <= 256 else 32) * 1024 * 1024

    out = pl.pallas_call(
        _dn_kernel,
        out_shape=jax.ShapeDtypeStruct((B_pad, out_pad), out_dtype),
        grid=grid,
        in_specs=[
            pl.BlockSpec((tb, F), lambda i: (i, 0)),                    # x tile
            const_spec(ws[0].shape), const_spec(bs[0].shape),           # fc0
            const_spec(ws[1].shape), const_spec(bs[1].shape),           # fc1
            const_spec(ws[2].shape), const_spec(bs[2].shape),           # fc2
            const_spec(ws[3].shape), const_spec(bs[3].shape),           # fc3
        ],
        out_specs=pl.BlockSpec((tb, out_pad), lambda i: (i, 0)),
        compiler_params=pltpu.CompilerParams(
            dimension_semantics=("parallel",),     # megacore-shards batch tiles
            vmem_limit_bytes=vmem_limit),
        cost_estimate=pl.CostEstimate(flops=flops, transcendentals=0,
                                      bytes_accessed=bytes_accessed),
    )(x_in, ws[0], bs[0], ws[1], bs[1], ws[2], bs[2], ws[3], bs[3])

    return out[:B, :out_dim]


def dn_reference(x, params):
    """Pure-JAX reference with the same bf16-in / f32-accumulate numerics."""
    h = x
    for w, b in params:
        acc = jnp.dot(h.astype(jnp.bfloat16), w.astype(jnp.bfloat16),
                      preferred_element_type=jnp.float32)
        h = jnp.maximum(acc + b, 0.0)
    return h


if __name__ == "__main__":
    key = jax.random.PRNGKey(0)
    kp, kx, kx2 = jax.random.split(key, 3)
    params = init_dn_params(kp)
    prepared = prepare_dn_params(params)     # bf16 weights cast ONCE, reused below

    # x: [B, 1024] feature vectors, i.e. what DNet.featNet (DenseNet-3D,
    # untranslated) would emit before the DN head.
    x = jax.random.normal(kx, (2, IN_CHANNELS), jnp.float32)
    y = dn_forward(x, prepared)
    jax.block_until_ready(y)
    ref = dn_reference(x, params)
    assert y.shape == (2, OUT_CHANNELS), y.shape
    assert jnp.allclose(y, ref, atol=1e-2, rtol=1e-2), \
        float(jnp.max(jnp.abs(y - ref)))

    # Exercise the multi-tile path (grid > 1, ragged batch padding).
    x2 = jax.random.normal(kx2, (40, IN_CHANNELS), jnp.float32)
    y2 = dn_forward(x2, prepared, tile_b=16)
    jax.block_until_ready(y2)
    ref2 = dn_reference(x2, params)
    assert y2.shape == (40, OUT_CHANNELS), y2.shape
    assert jnp.allclose(y2, ref2, atol=1e-2, rtol=1e-2), \
        float(jnp.max(jnp.abs(y2 - ref2)))

    print("KERNEL_OK")
</pallas_src>

<mosaic_0001>
module attributes {stable_mosaic.version = 11 : i64} {
  func.func @_dn_kernel(%arg0: i32, %arg1: memref<16x1024xf32, #tpu.memory_space<vmem>>, %arg2: memref<1024x512xbf16, #tpu.memory_space<vmem>>, %arg3: memref<1x512xf32, #tpu.memory_space<vmem>>, %arg4: memref<512x256xbf16, #tpu.memory_space<vmem>>, %arg5: memref<1x256xf32, #tpu.memory_space<vmem>>, %arg6: memref<256x128xbf16, #tpu.memory_space<vmem>>, %arg7: memref<1x128xf32, #tpu.memory_space<vmem>>, %arg8: memref<128x128xbf16, #tpu.memory_space<vmem>>, %arg9: memref<1x128xf32, #tpu.memory_space<vmem>>, %arg10: memref<16x128xf32, #tpu.memory_space<vmem>>) attributes {dimension_semantics = [#tpu.dimension_semantics<parallel>], iteration_bounds = array<i64: 1>, scalar_prefetch = 0 : i64, scratch_operands = 0 : i64, tpu.core_type = #tpu.core_type<tc>, window_params = [{transform_indices = @transform_0, window_bounds = array<i64: 16, 1024>}, {pipeline_mode = #tpu.pipeline_mode<synchronous>, transform_indices = @transform_1, window_bounds = array<i64: 1024, 512>}, {pipeline_mode = #tpu.pipeline_mode<synchronous>, transform_indices = @transform_2, window_bounds = array<i64: 1, 512>}, {pipeline_mode = #tpu.pipeline_mode<synchronous>, transform_indices = @transform_3, window_bounds = array<i64: 512, 256>}, {pipeline_mode = #tpu.pipeline_mode<synchronous>, transform_indices = @transform_4, window_bounds = array<i64: 1, 256>}, {pipeline_mode = #tpu.pipeline_mode<synchronous>, transform_indices = @transform_5, window_bounds = array<i64: 256, 128>}, {pipeline_mode = #tpu.pipeline_mode<synchronous>, transform_indices = @transform_6, window_bounds = array<i64: 1, 128>}, {pipeline_mode = #tpu.pipeline_mode<synchronous>, transform_indices = @transform_7, window_bounds = array<i64: 128, 128>}, {pipeline_mode = #tpu.pipeline_mode<synchronous>, transform_indices = @transform_8, window_bounds = array<i64: 1, 128>}, {transform_indices = @transform_9, window_bounds = array<i64: 16, 128>}]} {
    %c0 = arith.constant 0 : index
    %c0_0 = arith.constant 0 : index
    %0 = vector.load %arg1[%c0, %c0_0] : memref<16x1024xf32, #tpu.memory_space<vmem>>, vector<16x1024xf32>
    %1 = arith.truncf %0 : vector<16x1024xf32> to vector<16x1024xbf16>
    %c0_1 = arith.constant 0 : index
    %c0_2 = arith.constant 0 : index
    %2 = vector.load %arg2[%c0_1, %c0_2] : memref<1024x512xbf16, #tpu.memory_space<vmem>>, vector<1024x512xbf16>
    %cst = arith.constant dense<0.000000e+00> : vector<16x512xf32>
    %3 = tpu.matmul %1, %2, %cst {dimension_numbers = #tpu.dot_dimension_numbers<[1], [0], [0], [1], [0, 0, 1, 1], [], []>} : vector<16x1024xbf16>, vector<1024x512xbf16>, vector<16x512xf32> -> vector<16x512xf32>
    %c0_3 = arith.constant 0 : index
    %c0_4 = arith.constant 0 : index
    %4 = vector.load %arg3[%c0_3, %c0_4] : memref<1x512xf32, #tpu.memory_space<vmem>>, vector<1x512xf32>
    %5 = vector.broadcast %4 : vector<1x512xf32> to vector<16x512xf32>
    %6 = arith.addf %3, %5 : vector<16x512xf32>
    %cst_5 = arith.constant 0.000000e+00 : f32
    %7 = vector.broadcast %cst_5 : f32 to vector<16x512xf32>
    %8 = arith.maximumf %6, %7 : vector<16x512xf32>
    %9 = arith.truncf %8 : vector<16x512xf32> to vector<16x512xbf16>
    %c0_6 = arith.constant 0 : index
    %c0_7 = arith.constant 0 : index
    %10 = vector.load %arg4[%c0_6, %c0_7] : memref<512x256xbf16, #tpu.memory_space<vmem>>, vector<512x256xbf16>
    %cst_8 = arith.constant dense<0.000000e+00> : vector<16x256xf32>
    %11 = tpu.matmul %9, %10, %cst_8 {dimension_numbers = #tpu.dot_dimension_numbers<[1], [0], [0], [1], [0, 0, 1, 1], [], []>} : vector<16x512xbf16>, vector<512x256xbf16>, vector<16x256xf32> -> vector<16x256xf32>
    %c0_9 = arith.constant 0 : index
    %c0_10 = arith.constant 0 : index
    %12 = vector.load %arg5[%c0_9, %c0_10] : memref<1x256xf32, #tpu.memory_space<vmem>>, vector<1x256xf32>
    %13 = vector.broadcast %12 : vector<1x256xf32> to vector<16x256xf32>
    %14 = arith.addf %11, %13 : vector<16x256xf32>
    %cst_11 = arith.constant 0.000000e+00 : f32
    %15 = vector.broadcast %cst_11 : f32 to vector<16x256xf32>
    %16 = arith.maximumf %14, %15 : vector<16x256xf32>
    %17 = arith.truncf %16 : vector<16x256xf32> to vector<16x256xbf16>
    %c0_12 = arith.constant 0 : index
    %c0_13 = arith.constant 0 : index
    %18 = vector.load %arg6[%c0_12, %c0_13] : memref<256x128xbf16, #tpu.memory_space<vmem>>, vector<256x128xbf16>
    %cst_14 = arith.constant dense<0.000000e+00> : vector<16x128xf32>
    %19 = tpu.matmul %17, %18, %cst_14 {dimension_numbers = #tpu.dot_dimension_numbers<[1], [0], [0], [1], [0, 0, 1, 1], [], []>} : vector<16x256xbf16>, vector<256x128xbf16>, vector<16x128xf32> -> vector<16x128xf32>
    %c0_15 = arith.constant 0 : index
    %c0_16 = arith.constant 0 : index
    %20 = vector.load %arg7[%c0_15, %c0_16] : memref<1x128xf32, #tpu.memory_space<vmem>>, vector<1x128xf32>
    %21 = vector.broadcast %20 : vector<1x128xf32> to vector<16x128xf32>
    %22 = arith.addf %19, %21 : vector<16x128xf32>
    %cst_17 = arith.constant 0.000000e+00 : f32
    %23 = vector.broadcast %cst_17 : f32 to vector<16x128xf32>
    %24 = arith.maximumf %22, %23 : vector<16x128xf32>
    %25 = arith.truncf %24 : vector<16x128xf32> to vector<16x128xbf16>
    %c0_18 = arith.constant 0 : index
    %c0_19 = arith.constant 0 : index
    %26 = vector.load %arg8[%c0_18, %c0_19] : memref<128x128xbf16, #tpu.memory_space<vmem>>, vector<128x128xbf16>
    %cst_20 = arith.constant dense<0.000000e+00> : vector<16x128xf32>
    %27 = tpu.matmul %25, %26, %cst_20 {dimension_numbers = #tpu.dot_dimension_numbers<[1], [0], [0], [1], [0, 0, 1, 1], [], []>} : vector<16x128xbf16>, vector<128x128xbf16>, vector<16x128xf32> -> vector<16x128xf32>
    %c0_21 = arith.constant 0 : index
    %c0_22 = arith.constant 0 : index
    %28 = vector.load %arg9[%c0_21, %c0_22] : memref<1x128xf32, #tpu.memory_space<vmem>>, vector<1x128xf32>
    %29 = vector.broadcast %28 : vector<1x128xf32> to vector<16x128xf32>
    %30 = arith.addf %27, %29 : vector<16x128xf32>
    %cst_23 = arith.constant 0.000000e+00 : f32
    %31 = vector.broadcast %cst_23 : f32 to vector<16x128xf32>
    %32 = arith.maximumf %30, %31 : vector<16x128xf32>
    %c0_24 = arith.constant 0 : index
    %c0_25 = arith.constant 0 : index
    %33 = vector.load %arg10[%c0_24, %c0_25] : memref<16x128xf32, #tpu.memory_space<vmem>>, vector<16x128xf32>
    tpu.vector_store %arg10[%c0_24, %c0_25], %32 {strides = array<i32>} : memref<16x128xf32, #tpu.memory_space<vmem>>, vector<16x128xf32>,
    return
  }
  func.func @transform_0(%arg0: i32) -> (i32, i32) {
    %c0_i32 = arith.constant 0 : i32
    %c0_i32_0 = arith.constant 0 : i32
    return %arg0, %c0_i32 : i32, i32
  }
  func.func @transform_1(%arg0: i32) -> (i32, i32) {
    %c0_i32 = arith.constant 0 : i32
    %c0_i32_0 = arith.constant 0 : i32
    %c0_i32_1 = arith.constant 0 : i32
    return %c0_i32, %c0_i32_0 : i32, i32
  }
  func.func @transform_2(%arg0: i32) -> (i32, i32) {
    %c0_i32 = arith.constant 0 : i32
    %c0_i32_0 = arith.constant 0 : i32
    %c0_i32_1 = arith.constant 0 : i32
    return %c0_i32, %c0_i32_0 : i32, i32
  }
  func.func @transform_3(%arg0: i32) -> (i32, i32) {
    %c0_i32 = arith.constant 0 : i32
    %c0_i32_0 = arith.constant 0 : i32
    %c0_i32_1 = arith.constant 0 : i32
    return %c0_i32, %c0_i32_0 : i32, i32
  }
  func.func @transform_4(%arg0: i32) -> (i32, i32) {
    %c0_i32 = arith.constant 0 : i32
    %c0_i32_0 = arith.constant 0 : i32
    %c0_i32_1 = arith.constant 0 : i32
    return %c0_i32, %c0_i32_0 : i32, i32
  }
  func.func @transform_5(%arg0: i32) -> (i32, i32) {
    %c0_i32 = arith.constant 0 : i32
    %c0_i32_0 = arith.constant 0 : i32
    %c0_i32_1 = arith.constant 0 : i32
    return %c0_i32, %c0_i32_0 : i32, i32
  }
  func.func @transform_6(%arg0: i32) -> (i32, i32) {
    %c0_i32 = arith.constant 0 : i32
    %c0_i32_0 = arith.constant 0 : i32
    %c0_i32_1 = arith.constant 0 : i32
    return %c0_i32, %c0_i32_0 : i32, i32
  }
  func.func @transform_7(%arg0: i32) -> (i32, i32) {
    %c0_i32 = arith.constant 0 : i32
    %c0_i32_0 = arith.constant 0 : i32
    %c0_i32_1 = arith.constant 0 : i32
    return %c0_i32, %c0_i32_0 : i32, i32
  }
  func.func @transform_8(%arg0: i32) -> (i32, i32) {
    %c0_i32 = arith.constant 0 : i32
    %c0_i32_0 = arith.constant 0 : i32
    %c0_i32_1 = arith.constant 0 : i32
    return %c0_i32, %c0_i32_0 : i32, i32
  }
  func.func @transform_9(%arg0: i32) -> (i32, i32) {
    %c0_i32 = arith.constant 0 : i32
    %c0_i32_0 = arith.constant 0 : i32
    return %arg0, %c0_i32 : i32, i32
  }
}

</mosaic_0001>

<bundles_post_ra>
// kernel: tpu_custom_call.1
= control target key start
LH: loop header
LB: loop body
LE: loop exit
PB: predicated region body
PF: predicated region fallthrough
CT: control target
= control target key end

     0   :  { %14 = vsyncpa [#allocation3], 0  ;;  %s4117_s0 = inlined_call_operand.hbm [shape: f32[16,1024], index: 0, kind: input, shape index: {}]   ;;  %s4118_s1 = inlined_call_operand.hbm [shape: bf16[1024,512], index: 1, kind: input, shape index: {}]   ;;  %s4119_s2 = inlined_call_operand.vmem [shape: f32[1,512], index: 2, kind: input, shape index: {}]   ;;  %s4120_s3 = inlined_call_operand.hbm [shape: bf16[512,256], index: 3, kind: input, shape index: {}]   ;;  %s4121_s4 = inlined_call_operand.vmem [shape: f32[1,256], index: 4, kind: input, shape index: {}]   ;;  %s4122_s5 = inlined_call_operand.hbm [shape: bf16[256,128], index: 5, kind: input, shape index: {}]   ;;  %s4123_s6 = inlined_call_operand.vmem [shape: f32[1,128], index: 6, kind: input, shape index: {}]   ;;  %s4124_s7 = inlined_call_operand.hbm [shape: bf16[128,128], index: 7, kind: input, shape index: {}]   ;;  %s4125_s8 = inlined_call_operand.vmem [shape: f32[1,128], index: 8, kind: input, shape index: {}]   ;;  %s4126_s9 = inlined_call_operand.hbm [shape: f32[16,128], index: 9, kind: output, shape index: {}]  }
   0x1   :  { %15 = vsyncpa [#allocation6], 0 }
   0x2   :  { %16 = vsyncpa [#allocation9], 0 }
   0x3   :  { %17 = vsyncpa [#allocation4], 0  ;;  %s3938_s30 = smov [#allocation5]   ;;  %s3798_s13 = scalar_lea.hbm %s4118_s1, 32768 }
   0x4   :  { %s35_s10 = sshll.u32 %s3938_s30, 4  ;;  %p3799_p0 = scmp.ne.s32.totalorder %s4118_s1, %s3798_s13  ;;  %s36_s10 = int_to_ptr.vmem [resolvable:$true] %s35_s10 }
   0x5   :  { %p3802_p1 = scmp.lt.u32.totalorder %s3798_s13, %s4118_s1 }
   0x7   :  { %p3804_p2 = pnand %p3802_p1, %p3799_p0 }
   0x9   :  { %3807 = shalt.err (!%p3804_p2)
}
   0xa   :  { %s3808_s18 = scalar_lea.vmem %s36_s10, 32768  ;;  %p3813_p4 = scmp.lt.s32.totalorder %s36_s10, %s36_s10 }
   0xb   :  { %p3809_p3 = scmp.ne.s32.totalorder %s36_s10, %s3808_s18  ;;  %p3814_p5 = scmp.lt.s32.totalorder %s3808_s18, %s3808_s18 }
   0xd   :  { %p3815_p6 = por %p3814_p5, %p3813_p4 }
   0xf   :  { %p3816_p7 = pnand %p3815_p6, %p3809_p3 }
  0x11   :  { %3819 = shalt.err (!%p3816_p7)
}
  0x12   :  { %s3939_s19 = smov 256   ;;  %s3940_s20 = smov 16  }
  0x13   :  { %41 = dma.hbm_to_vmem [thread:$0]  %s4118_s1, 32768, %s36_s10, [#allocation6], %s3939_s19, %s3939_s19, %s3940_s20  }
  0x14   :  { %s3941_s23 = smov [#allocation8]   ;;  %s3942_s25 = smov [#allocation2]  }
  0x15   :  { %s63_s24 = sshll.u32 %s3941_s23, 4  ;;  %s23_s26 = sshll.u32 %s3942_s25, 4  ;;  %s64_s24 = int_to_ptr.vmem [resolvable:$true] %s63_s24  ;;  %s24_s26 = int_to_ptr.vmem [resolvable:$true] %s23_s26 }
  0x16   :  { %s3820_s29 = scalar_lea.hbm %s4122_s5, 2048 }
  0x17   :  { %p3821_p8 = scmp.ne.s32.totalorder %s4122_s5, %s3820_s29  ;;  %p3824_p9 = scmp.lt.u32.totalorder %s3820_s29, %s4122_s5 }
  0x19   :  { %p3826_p10 = pnand %p3824_p9, %p3821_p8 }
  0x1b   :  { %3829 = shalt.err (!%p3826_p10)
}
  0x1c   :  { %s3830_s1 = scalar_lea.vmem %s64_s24, 2048  ;;  %p3835_p12 = scmp.lt.s32.totalorder %s64_s24, %s64_s24 }
  0x1d   :  { %p3831_p11 = scmp.ne.s32.totalorder %s64_s24, %s3830_s1  ;;  %p3836_p13 = scmp.lt.s32.totalorder %s3830_s1, %s3830_s1 }
  0x1f   :  { %p3837_p0 = por %p3836_p13, %p3835_p12 }
  0x21   :  { %p3838_p1 = pnand %p3837_p0, %p3831_p11 }
  0x23   :  { %3841 = shalt.err (!%p3838_p1)
}
  0x24   :  { %s3943_s10 = smov 64   ;;  %s3944_s14 = smov 4  }
  0x25   :  { %69 = dma.hbm_to_vmem [thread:$0]  %s4122_s5, 2048, %s64_s24, [#allocation9], %s3943_s10, %s3943_s10, %s3944_s14  }
  0x26   :  { %s3842_s19 = scalar_lea.hbm %s4117_s0, 2048 }
  0x27   :  { %p3843_p2 = scmp.ne.s32.totalorder %s4117_s0, %s3842_s19  ;;  %p3846_p3 = scmp.lt.u32.totalorder %s3842_s19, %s4117_s0 }
  0x29   :  { %p3848_p4 = pnand %p3846_p3, %p3843_p2 }
  0x2b   :  { %3851 = shalt.err (!%p3848_p4)
}
  0x2c   :  { %s3852_s25 = scalar_lea.vmem %s24_s26, 2048  ;;  %p3857_p6 = scmp.lt.s32.totalorder %s24_s26, %s24_s26 }
  0x2d   :  { %p3853_p5 = scmp.ne.s32.totalorder %s24_s26, %s3852_s25  ;;  %p3858_p7 = scmp.lt.s32.totalorder %s3852_s25, %s3852_s25 }
  0x2f   :  { %p3859_p8 = por %p3858_p7, %p3857_p6 }
  0x31   :  { %p3860_p9 = pnand %p3859_p8, %p3853_p5 }
  0x33   :  { %3863 = shalt.err (!%p3860_p9)
}
  0x34   :  { %s3945_s5 = smov 1024   ;;  %s3946_s28 = smov [#allocation7]  }
  0x35   :  { %29 = dma.hbm_to_vmem [thread:$0]  %s4117_s0, 2048, %s24_s26, [#allocation3], %s3945_s5, %s3945_s5, %s3943_s10  }
  0x36   :  { %s49_s29 = sshll.u32 %s3946_s28, 4  ;;  %s3864_s12 = scalar_lea.hbm %s4120_s3, 8192  ;;  %s50_s29 = int_to_ptr.vmem [resolvable:$true] %s49_s29 }
  0x37   :  { %p3865_p10 = scmp.ne.s32.totalorder %s4120_s3, %s3864_s12  ;;  %p3868_p11 = scmp.lt.u32.totalorder %s3864_s12, %s4120_s3 }
  0x39   :  { %p3870_p12 = pnand %p3868_p11, %p3865_p10 }
  0x3b   :  { %3873 = shalt.err (!%p3870_p12)
}
  0x3c   :  { %s3874_s17 = scalar_lea.vmem %s50_s29, 8192  ;;  %p3879_p0 = scmp.lt.s32.totalorder %s50_s29, %s50_s29 }
  0x3d   :  { %p3875_p13 = scmp.ne.s32.totalorder %s50_s29, %s3874_s17  ;;  %p3880_p1 = scmp.lt.s32.totalorder %s3874_s17, %s3874_s17 }
  0x3f   :  { %p3881_p2 = por %p3880_p1, %p3879_p0 }
  0x41   :  { %p3882_p3 = pnand %p3881_p2, %p3875_p13 }
  0x43   :  { %3885 = shalt.err (!%p3882_p3)
}
  0x44   :  { %s3947_s0 = smov 128   ;;  %s3948_s26 = smov 8  }
  0x45   :  { %55 = dma.hbm_to_vmem [thread:$0]  %s4120_s3, 8192, %s50_s29, [#allocation6], %s3947_s0, %s3947_s0, %s3948_s26  }
  0x46   :  { %s3949_s20 = smov [#allocation10]   ;;  %s3886_s25 = scalar_lea.hbm %s4124_s7, 1024 }
  0x47   :  { %s77_s21 = sshll.u32 %s3949_s20, 4  ;;  %p3887_p4 = scmp.ne.s32.totalorder %s4124_s7, %s3886_s25  ;;  %s78_s21 = int_to_ptr.vmem [resolvable:$true] %s77_s21 }
  0x48   :  { %p3890_p5 = scmp.lt.u32.totalorder %s3886_s25, %s4124_s7 }
  0x4a   :  { %p3892_p6 = pnand %p3890_p5, %p3887_p4 }
  0x4c   :  { %3895 = shalt.err (!%p3892_p6)
}
  0x4d   :  { %s3896_s30 = scalar_lea.vmem %s78_s21, 1024  ;;  %p3901_p8 = scmp.lt.s32.totalorder %s78_s21, %s78_s21 }
  0x4e   :  { %p3897_p7 = scmp.ne.s32.totalorder %s78_s21, %s3896_s30  ;;  %p3902_p9 = scmp.lt.s32.totalorder %s3896_s30, %s3896_s30 }
  0x50   :  { %p3903_p10 = por %p3902_p9, %p3901_p8 }
  0x52   :  { %p3904_p11 = pnand %p3903_p10, %p3897_p7 }
  0x54   :  { %3907 = shalt.err (!%p3904_p11)
}
  0x55   :  { %83 = dma.hbm_to_vmem [thread:$0]  %s4124_s7, 1024, %s78_s21, [#allocation9], %s3943_s10, %s3943_s10, %s3944_s14  }
  0x56   :  { %3930 = dma.done.wait [#allocation3], 2048  }
  0x57   :  { %3931 = vsyncadd [#allocation3], 4294965248 }
  0x58   :  { %3932 = dma.done.wait [#allocation6], 40960  }
  0x59   :  { %3933 = vsyncadd [#allocation6], 4294926336 }
  0x5a   :  { %3934 = dma.done.wait [#allocation9], 3072  }
  0x5b   :  { %3935 = vsyncadd [#allocation9], 4294964224  ;;  %v3294_v0 = vld [vmem:[#allocation5 + $0x4] ss:$16 sps:$4 sm:$0xff]   ;;  %v3296_v1 = vld [vmem:[#allocation5 + $0xc] ss:$16 sps:$4 sm:$0xff]  }
  0x5c   :  { %1684 = vmatprep.subr.bf16.mxu0 %v3294_v0  ;;  %v3298_v2 = vld [vmem:[#allocation5] ss:$16 sps:$4 sm:$0xff]   ;;  %v3299_v3 = vld [vmem:[#allocation5 + $0x8] ss:$16 sps:$4 sm:$0xff]   ;;  %1856 = vmatprep.subr.bf16.mxu1 %v3296_v1  ;;  %v3300_v4 = vld [vmem:[#allocation5 + $0x24] ss:$16 sps:$4 sm:$0xff]  }
  0x5d   :  { %1685 = vmatpush1.bf16.msra.mxu0 %v3298_v2  ;;  %1857 = vmatpush1.bf16.msra.mxu1 %v3299_v3  ;;  %v3302_v5 = vld [vmem:[#allocation5 + $0x2c] ss:$16 sps:$4 sm:$0xff]   ;;  %v3304_v6 = vld [vmem:[#allocation5 + $0x20] ss:$16 sps:$4 sm:$0xff]   ;;  %v3305_v7 = vld [vmem:[#allocation5 + $0x28] ss:$16 sps:$4 sm:$0xff]  }
  0x5e   :  { %1686 = vmatprep.subr.bf16.mxu0 %v3300_v4  ;;  %1858 = vmatprep.subr.bf16.mxu1 %v3302_v5  ;;  %v3306_v8 = vld [vmem:[#allocation5 + $0x44] ss:$16 sps:$4 sm:$0xff]   ;;  %v3308_v9 = vld [vmem:[#allocation5 + $0x4c] ss:$16 sps:$4 sm:$0xff]   ;;  %v3310_v10 = vld [vmem:[#allocation5 + $0x40] ss:$16 sps:$4 sm:$0xff]  }
  0x5f   :  { %v3311_v11 = vld [vmem:[#allocation5 + $0x48] ss:$16 sps:$4 sm:$0xff]   ;;  %v3312_v12 = vld [vmem:[#allocation5 + $0x64] ss:$16 sps:$4 sm:$0xff]   ;;  %v3314_v13 = vld [vmem:[#allocation5 + $0x6c] ss:$16 sps:$4 sm:$0xff]  }
  0x60   :  { %v3316_v14 = vld [vmem:[#allocation5 + $0x60] ss:$16 sps:$4 sm:$0xff]   ;;  %v3317_v15 = vld [vmem:[#allocation5 + $0x68] ss:$16 sps:$4 sm:$0xff]   ;;  %v3318_v16 = vld [vmem:[#allocation5 + $0x84] ss:$16 sps:$4 sm:$0xff]  }
  0x61   :  { %1687 = vmatpush1.bf16.msra.mxu0 %v3304_v6  ;;  %1859 = vmatpush1.bf16.msra.mxu1 %v3305_v7  ;;  %v3320_v17 = vld [vmem:[#allocation5 + $0x8c] ss:$16 sps:$4 sm:$0xff]   ;;  %v3322_v18 = vld [vmem:[#allocation5 + $0x80] ss:$16 sps:$4 sm:$0xff]   ;;  %v3323_v19 = vld [vmem:[#allocation5 + $0x88] ss:$16 sps:$4 sm:$0xff]  }
  0x62   :  { %1688 = vmatprep.subr.bf16.mxu0 %v3306_v8  ;;  %1860 = vmatprep.subr.bf16.mxu1 %v3308_v9  ;;  %v3324_v20 = vld [vmem:[#allocation5 + $0xa4] ss:$16 sps:$4 sm:$0xff]   ;;  %v3326_v21 = vld [vmem:[#allocation5 + $0xac] ss:$16 sps:$4 sm:$0xff]   ;;  %v3328_v22 = vld [vmem:[#allocation5 + $0xa0] ss:$16 sps:$4 sm:$0xff]  }
  0x63   :  { %v3329_v23 = vld [vmem:[#allocation5 + $0xa8] ss:$16 sps:$4 sm:$0xff]   ;;  %v3330_v24 = vld [vmem:[#allocation5 + $0xc4] ss:$16 sps:$4 sm:$0xff]   ;;  %v3332_v25 = vld [vmem:[#allocation5 + $0xcc] ss:$16 sps:$4 sm:$0xff]  }
  0x64   :  { %v3334_v26 = vld [vmem:[#allocation5 + $0xc0] ss:$16 sps:$4 sm:$0xff]   ;;  %v3335_v27 = vld [vmem:[#allocation5 + $0xc8] ss:$16 sps:$4 sm:$0xff]   ;;  %v3336_v28 = vld [vmem:[#allocation5 + $0xe4] ss:$16 sps:$4 sm:$0xff]  }
  0x65   :  { %1689 = vmatpush1.bf16.msra.mxu0 %v3310_v10  ;;  %1861 = vmatpush1.bf16.msra.mxu1 %v3311_v11  ;;  %v3338_v29 = vld [vmem:[#allocation5 + $0xec] ss:$16 sps:$4 sm:$0xff]   ;;  %v3340_v30 = vld [vmem:[#allocation5 + $0xe0] ss:$16 sps:$4 sm:$0xff]   ;;  %v3341_v31 = vld [vmem:[#allocation5 + $0xe8] ss:$16 sps:$4 sm:$0xff]  }
  0x66   :  { %1690 = vmatprep.subr.bf16.mxu0 %v3312_v12  ;;  %1862 = vmatprep.subr.bf16.mxu1 %v3314_v13  ;;  %v3342_v32 = vld [vmem:[#allocation5 + $0x104] ss:$16 sps:$4 sm:$0xff]   ;;  %v3344_v33 = vld [vmem:[#allocation5 + $0x10c] ss:$16 sps:$4 sm:$0xff]   ;;  %v3346_v34 = vld [vmem:[#allocation5 + $0x100] ss:$16 sps:$4 sm:$0xff]  }
  0x67   :  { %v3347_v35 = vld [vmem:[#allocation5 + $0x108] ss:$16 sps:$4 sm:$0xff]   ;;  %v3348_v36 = vld [vmem:[#allocation5 + $0x124] ss:$16 sps:$4 sm:$0xff]   ;;  %v3350_v37 = vld [vmem:[#allocation5 + $0x12c] ss:$16 sps:$4 sm:$0xff]  }
  0x68   :  { %v3352_v38 = vld [vmem:[#allocation5 + $0x120] ss:$16 sps:$4 sm:$0xff]   ;;  %v3353_v39 = vld [vmem:[#allocation5 + $0x128] ss:$16 sps:$4 sm:$0xff]   ;;  %v3354_v40 = vld [vmem:[#allocation5 + $0x144] ss:$16 sps:$4 sm:$0xff]  }
  0x69   :  { %1691 = vmatpush1.bf16.msra.mxu0 %v3316_v14  ;;  %1863 = vmatpush1.bf16.msra.mxu1 %v3317_v15  ;;  %v3356_v41 = vld [vmem:[#allocation5 + $0x14c] ss:$16 sps:$4 sm:$0xff]   ;;  %v3358_v42 = vld [vmem:[#allocation5 + $0x140] ss:$16 sps:$4 sm:$0xff]   ;;  %v3359_v43 = vld [vmem:[#allocation5 + $0x148] ss:$16 sps:$4 sm:$0xff]  }
  0x6a   :  { %1692 = vmatprep.subr.bf16.mxu0 %v3318_v16  ;;  %1864 = vmatprep.subr.bf16.mxu1 %v3320_v17  ;;  %v3360_v44 = vld [vmem:[#allocation5 + $0x164] ss:$16 sps:$4 sm:$0xff]   ;;  %v3362_v45 = vld [vmem:[#allocation5 + $0x16c] ss:$16 sps:$4 sm:$0xff]   ;;  %v3364_v48 = vld [vmem:[#allocation5 + $0x160] ss:$16 sps:$4 sm:$0xff]  }
  0x6b   :  { %v103_v46 = vld [vmem:[#allocation2 + $0x8] sm:$0xff]  ;;  %v3366_v51 = vld [vmem:[#allocation5 + $0x184] ss:$16 sps:$4 sm:$0xff]   ;;  %v3370_v53 = vld [vmem:[#allocation5 + $0x180] ss:$16 sps:$4 sm:$0xff]   ;;  %vm3951_vm0 = vmmov 0  }
  0x6c   :  { %v111_v47 = vld [vmem:[#allocation2 + $0x48] sm:$0xff]  ;;  %v3372_v55 = vld [vmem:[#allocation5 + $0x1a4] ss:$16 sps:$4 sm:$0xff]   ;;  %v3376_v57 = vld [vmem:[#allocation5 + $0x1a0] ss:$16 sps:$4 sm:$0xff]  }
  0x6d   :  { %1693 = vmatpush1.bf16.msra.mxu0 %v3322_v18  ;;  %1865 = vmatpush1.bf16.msra.mxu1 %v3323_v19  ;;  %v3365_v49 = vld [vmem:[#allocation5 + $0x168] ss:$16 sps:$4 sm:$0xff]   ;;  %v119_v50 = vpack.c.bf16 %v111_v47, %v103_v46  ;;  %v3368_v52 = vld [vmem:[#allocation5 + $0x18c] ss:$16 sps:$4 sm:$0xff]   ;;  %v3378_v59 = vld [vmem:[#allocation5 + $0x1c4] ss:$16 sps:$4 sm:$0xff]  }
  0x6e   :  { %1694 = vmatprep.subr.bf16.mxu0 %v3324_v20  ;;  %1866 = vmatprep.subr.bf16.mxu1 %v3326_v21  ;;  %v3371_v54 = vld [vmem:[#allocation5 + $0x188] ss:$16 sps:$4 sm:$0xff]   ;;  %v3374_v56 = vld [vmem:[#allocation5 + $0x1ac] ss:$16 sps:$4 sm:$0xff]   ;;  %v3382_v61 = vld [vmem:[#allocation5 + $0x1c0] ss:$16 sps:$4 sm:$0xff]  }
  0x6f   :  { %1716 = vmatprep.mubr.bf16.mxu0 %v119_v50  ;;  %1888 = vmatprep.mubr.bf16.mxu1 %v119_v50  ;;  %v3377_v58 = vld [vmem:[#allocation5 + $0x1a8] ss:$16 sps:$4 sm:$0xff]   ;;  %v3380_v60 = vld [vmem:[#allocation5 + $0x1cc] ss:$16 sps:$4 sm:$0xff]   ;;  %v3384_v63 = vld [vmem:[#allocation5 + $0x1e4] ss:$16 sps:$4 sm:$0xff]  }
  0x70   :  { %v3383_v62 = vld [vmem:[#allocation5 + $0x1c8] ss:$16 sps:$4 sm:$0xff]   ;;  %v3386_v0 = vld [vmem:[#allocation5 + $0x1ec] ss:$16 sps:$4 sm:$0xff]   ;;  %v3388_v1 = vld [vmem:[#allocation5 + $0x1e0] ss:$16 sps:$4 sm:$0xff]  }
  0x71   :  { %1695 = vmatpush1.bf16.msra.mxu0 %v3328_v22  ;;  %1867 = vmatpush1.bf16.msra.mxu1 %v3329_v23  ;;  %v3389_v2 = vld [vmem:[#allocation5 + $0x1e8] ss:$16 sps:$4 sm:$0xff]   ;;  %v3392_v3 = vld [vmem:[#allocation5 + $0x204] ss:$16 sps:$4 sm:$0xff]   ;;  %v3395_v6 = vld [vmem:[#allocation5 + $0x20c] ss:$16 sps:$4 sm:$0xff]  }
  0x72   :  { %1696 = vmatprep.subr.bf16.mxu0 %v3330_v24  ;;  %1868 = vmatprep.subr.bf16.mxu1 %v3332_v25  ;;  %v102_v4 = vld [vmem:[#allocation2] sm:$0xff]  ;;  %v3393_v8 = vld [vmem:[#allocation5 + $0x208] ss:$16 sps:$4 sm:$0xff]   ;;  %v3401_v11 = vld [vmem:[#allocation5 + $0x22c] ss:$16 sps:$4 sm:$0xff]  }
  0x73   :  { %v110_v5 = vld [vmem:[#allocation2 + $0x40] sm:$0xff]  ;;  %v3399_v13 = vld [vmem:[#allocation5 + $0x228] ss:$16 sps:$4 sm:$0xff]   ;;  %v3407_v15 = vld [vmem:[#allocation5 + $0x24c] ss:$16 sps:$4 sm:$0xff]  }
  0x74   :  { %v3390_v7 = vld [vmem:[#allocation5 + $0x200] ss:$16 sps:$4 sm:$0xff]   ;;  %v118_v9 = vpack.c.bf16 %v110_v5, %v102_v4  ;;  %v3398_v10 = vld [vmem:[#allocation5 + $0x224] ss:$16 sps:$4 sm:$0xff]   ;;  %v3405_v17 = vld [vmem:[#allocation5 + $0x248] ss:$16 sps:$4 sm:$0xff]  }
  0x75   :  { %1697 = vmatpush1.bf16.msra.mxu0 %v3334_v26  ;;  %1869 = vmatpush1.bf16.msra.mxu1 %v3335_v27  ;;  %v3396_v12 = vld [vmem:[#allocation5 + $0x220] ss:$16 sps:$4 sm:$0xff]   ;;  %v3404_v14 = vld [vmem:[#allocation5 + $0x244] ss:$16 sps:$4 sm:$0xff]   ;;  %v3413_v19 = vld [vmem:[#allocation5 + $0x26c] ss:$16 sps:$4 sm:$0xff]  }
  0x76   :  { %1698 = vmatprep.subr.bf16.mxu0 %v3336_v28  ;;  %1870 = vmatprep.subr.bf16.mxu1 %v3338_v29  ;;  %v3402_v16 = vld [vmem:[#allocation5 + $0x240] ss:$16 sps:$4 sm:$0xff]   ;;  %v3410_v18 = vld [vmem:[#allocation5 + $0x264] ss:$16 sps:$4 sm:$0xff]   ;;  %v3411_v21 = vld [vmem:[#allocation5 + $0x268] ss:$16 sps:$4 sm:$0xff]  }
  0x77   :  { %v3408_v20 = vld [vmem:[#allocation5 + $0x260] ss:$16 sps:$4 sm:$0xff]   ;;  %v3416_v22 = vld [vmem:[#allocation5 + $0x284] ss:$16 sps:$4 sm:$0xff]   ;;  %v3419_v23 = vld [vmem:[#allocation5 + $0x28c] ss:$16 sps:$4 sm:$0xff]  }
  0x78   :  { %v3414_v24 = vld [vmem:[#allocation5 + $0x280] ss:$16 sps:$4 sm:$0xff]   ;;  %v3417_v25 = vld [vmem:[#allocation5 + $0x288] ss:$16 sps:$4 sm:$0xff]   ;;  %v3422_v26 = vld [vmem:[#allocation5 + $0x2a4] ss:$16 sps:$4 sm:$0xff]  }
  0x79   :  { %1699 = vmatpush1.bf16.msra.mxu0 %v3340_v30  ;;  %1871 = vmatpush1.bf16.msra.mxu1 %v3341_v31  ;;  %v3425_v27 = vld [vmem:[#allocation5 + $0x2ac] ss:$16 sps:$4 sm:$0xff]   ;;  %v3420_v28 = vld [vmem:[#allocation5 + $0x2a0] ss:$16 sps:$4 sm:$0xff]   ;;  %v3423_v29 = vld [vmem:[#allocation5 + $0x2a8] ss:$16 sps:$4 sm:$0xff]  }
  0x7a   :  { %1700 = vmatprep.subr.bf16.mxu0 %v3342_v32  ;;  %1872 = vmatprep.subr.bf16.mxu1 %v3344_v33  ;;  %v3428_v30 = vld [vmem:[#allocation5 + $0x2c4] ss:$16 sps:$4 sm:$0xff]   ;;  %v3431_v31 = vld [vmem:[#allocation5 + $0x2cc] ss:$16 sps:$4 sm:$0xff]   ;;  %v3444_v47 = vld [vmem:[#allocation5 + $0x320] ss:$16 sps:$4 sm:$0xff]  }
  0x7b   :  { %v105_v32 = vld [vmem:[#allocation2 + $0x18] sm:$0xff]  ;;  %v3482_v5 = vld [vmem:[#allocation5 + $0x3e4] ss:$16 sps:$4 sm:$0xff]  }
  0x7c   :  { %v113_v33 = vld [vmem:[#allocation2 + $0x58] sm:$0xff] }
  0x7d   :  { %1701 = vmatpush1.bf16.msra.mxu0 %v3346_v34  ;;  %1873 = vmatpush1.bf16.msra.mxu1 %v3347_v35  ;;  %v3426_v34 = vld [vmem:[#allocation5 + $0x2c0] ss:$16 sps:$4 sm:$0xff]   ;;  %v3429_v35 = vld [vmem:[#allocation5 + $0x2c8] ss:$16 sps:$4 sm:$0xff]   ;;  %v3449_v46 = vld [vmem:[#allocation5 + $0x32c] ss:$16 sps:$4 sm:$0xff]  }
  0x7e   :  { %1702 = vmatprep.subr.bf16.mxu0 %v3348_v36  ;;  %1874 = vmatprep.subr.bf16.mxu1 %v3350_v37  ;;  %v121_v36 = vpack.c.bf16 %v113_v33, %v105_v32  ;;  %v3434_v37 = vld [vmem:[#allocation5 + $0x2e4] ss:$16 sps:$4 sm:$0xff]   ;;  %v3455_v50 = vld [vmem:[#allocation5 + $0x34c] ss:$16 sps:$4 sm:$0xff]   ;;  %v3477_v4 = vld [vmem:[#allocation5 + $0x3c8] ss:$16 sps:$4 sm:$0xff]  }
  0x7f   :  { %v3515_v32 = vld [vmem:[#allocation5 + $0x48c] ss:$16 sps:$4 sm:$0xff]   ;;  %v3510_v33 = vld [vmem:[#allocation5 + $0x480] ss:$16 sps:$4 sm:$0xff]  }
  0x81   :  { %1703 = vmatpush1.bf16.msra.mxu0 %v3352_v38  ;;  %1875 = vmatpush1.bf16.msra.mxu1 %v3353_v39  ;;  %v3437_v38 = vld [vmem:[#allocation5 + $0x2ec] ss:$16 sps:$4 sm:$0xff]   ;;  %v3432_v39 = vld [vmem:[#allocation5 + $0x2e0] ss:$16 sps:$4 sm:$0xff]  }
  0x82   :  { %1704 = vmatprep.subr.bf16.mxu0 %v3354_v40  ;;  %1876 = vmatprep.subr.bf16.mxu1 %v3356_v41  ;;  %v3435_v40 = vld [vmem:[#allocation5 + $0x2e8] ss:$16 sps:$4 sm:$0xff]   ;;  %v3440_v41 = vld [vmem:[#allocation5 + $0x304] ss:$16 sps:$4 sm:$0xff]  }
  0x85   :  { %1705 = vmatpush1.bf16.msra.mxu0 %v3358_v42  ;;  %1877 = vmatpush1.bf16.msra.mxu1 %v3359_v43  ;;  %v3443_v42 = vld [vmem:[#allocation5 + $0x30c] ss:$16 sps:$4 sm:$0xff]   ;;  %v3438_v43 = vld [vmem:[#allocation5 + $0x300] ss:$16 sps:$4 sm:$0xff]  }
  0x86   :  { %1706 = vmatprep.subr.bf16.mxu0 %v3360_v44  ;;  %1878 = vmatprep.subr.bf16.mxu1 %v3362_v45  ;;  %v3441_v44 = vld [vmem:[#allocation5 + $0x308] ss:$16 sps:$4 sm:$0xff]   ;;  %v3446_v45 = vld [vmem:[#allocation5 + $0x324] ss:$16 sps:$4 sm:$0xff]  }
  0x89   :  { %1707 = vmatpush1.bf16.msra.mxu0 %v3364_v48  ;;  %1879 = vmatpush1.bf16.msra.mxu1 %v3365_v49  ;;  %v3447_v48 = vld [vmem:[#allocation5 + $0x328] ss:$16 sps:$4 sm:$0xff]   ;;  %v3452_v49 = vld [vmem:[#allocation5 + $0x344] ss:$16 sps:$4 sm:$0xff]  }
  0x8a   :  { %1708 = vmatprep.subr.bf16.mxu0 %v3366_v51  ;;  %1880 = vmatprep.subr.bf16.mxu1 %v3368_v52  ;;  %v3450_v51 = vld [vmem:[#allocation5 + $0x340] ss:$16 sps:$4 sm:$0xff]   ;;  %v3453_v52 = vld [vmem:[#allocation5 + $0x348] ss:$16 sps:$4 sm:$0xff]  }
  0x8d   :  { %1709 = vmatpush1.bf16.msra.mxu0 %v3370_v53  ;;  %1881 = vmatpush1.bf16.msra.mxu1 %v3371_v54  ;;  %v3458_v53 = vld [vmem:[#allocation5 + $0x364] ss:$16 sps:$4 sm:$0xff]   ;;  %v3461_v54 = vld [vmem:[#allocation5 + $0x36c] ss:$16 sps:$4 sm:$0xff]  }
  0x8e   :  { %1710 = vmatprep.subr.bf16.mxu0 %v3372_v55  ;;  %1882 = vmatprep.subr.bf16.mxu1 %v3374_v56  ;;  %v3456_v55 = vld [vmem:[#allocation5 + $0x360] ss:$16 sps:$4 sm:$0xff]   ;;  %v3459_v56 = vld [vmem:[#allocation5 + $0x368] ss:$16 sps:$4 sm:$0xff]  }
  0x91   :  { %1711 = vmatpush1.bf16.msra.mxu0 %v3376_v57  ;;  %1883 = vmatpush1.bf16.msra.mxu1 %v3377_v58  ;;  %v3464_v57 = vld [vmem:[#allocation5 + $0x384] ss:$16 sps:$4 sm:$0xff]   ;;  %v3467_v58 = vld [vmem:[#allocation5 + $0x38c] ss:$16 sps:$4 sm:$0xff]  }
  0x92   :  { %1712 = vmatprep.subr.bf16.mxu0 %v3378_v59  ;;  %1884 = vmatprep.subr.bf16.mxu1 %v3380_v60  ;;  %v3462_v59 = vld [vmem:[#allocation5 + $0x380] ss:$16 sps:$4 sm:$0xff]   ;;  %v3465_v60 = vld [vmem:[#allocation5 + $0x388] ss:$16 sps:$4 sm:$0xff]  }
  0x95   :  { %1713 = vmatpush1.bf16.msra.mxu0 %v3382_v61  ;;  %1885 = vmatpush1.bf16.msra.mxu1 %v3383_v62  ;;  %v3470_v61 = vld [vmem:[#allocation5 + $0x3a4] ss:$16 sps:$4 sm:$0xff]   ;;  %v3473_v62 = vld [vmem:[#allocation5 + $0x3ac] ss:$16 sps:$4 sm:$0xff]  }
  0x96   :  { %1714 = vmatprep.subr.bf16.mxu0 %v3384_v63  ;;  %1886 = vmatprep.subr.bf16.mxu1 %v3386_v0  ;;  %v3468_v63 = vld [vmem:[#allocation5 + $0x3a0] ss:$16 sps:$4 sm:$0xff]   ;;  %v3471_v0 = vld [vmem:[#allocation5 + $0x3a8] ss:$16 sps:$4 sm:$0xff]  }
  0x99   :  { %1715 = vmatpush1.bf16.msra.mxu0 %v3388_v1  ;;  %1887 = vmatpush1.bf16.msra.mxu1 %v3389_v2  ;;  %v3476_v1 = vld [vmem:[#allocation5 + $0x3c4] ss:$16 sps:$4 sm:$0xff]   ;;  %v3479_v2 = vld [vmem:[#allocation5 + $0x3cc] ss:$16 sps:$4 sm:$0xff]  }
  0x9a   :  { %1727 = vmatprep.subr.bf16.mxu0 %v3392_v3  ;;  %1899 = vmatprep.subr.bf16.mxu1 %v3395_v6  ;;  %v3474_v3 = vld [vmem:[#allocation5 + $0x3c0] ss:$16 sps:$4 sm:$0xff]   ;;  %v3485_v6 = vld [vmem:[#allocation5 + $0x3ec] ss:$16 sps:$4 sm:$0xff]  }
  0x9c   :  { %1717 = vmatmul.mubr.bf16.vlgmr.msra.gmra.mrb[0].mxu0 %v118_v9  ;;  %1889 = vmatmul.mubr.bf16.vlgmr.msra.gmra.mrb[0].mxu1 %v118_v9  ;;  %v3488_v9 = vld [vmem:[#allocation5 + $0x404] ss:$16 sps:$4 sm:$0xff]  }
  0x9d   :  { %1728 = vmatpush1.bf16.msra.mxu0 %v3390_v7  ;;  %1900 = vmatpush1.bf16.msra.mxu1 %v3393_v8  ;;  %v3480_v7 = vld [vmem:[#allocation5 + $0x3e0] ss:$16 sps:$4 sm:$0xff]   ;;  %v3483_v8 = vld [vmem:[#allocation5 + $0x3e8] ss:$16 sps:$4 sm:$0xff]  }
  0x9e   :  { %1729 = vmatprep.subr.bf16.mxu0 %v3398_v10  ;;  %1901 = vmatprep.subr.bf16.mxu1 %v3401_v11  ;;  %v104_v10 = vld [vmem:[#allocation2 + $0x10] sm:$0xff] }
  0x9f   :  { %1759 = vmatprep.mubr.bf16.mxu0 %v121_v36  ;;  %1931 = vmatprep.mubr.bf16.mxu1 %v121_v36  ;;  %v112_v11 = vld [vmem:[#allocation2 + $0x50] sm:$0xff]  ;;  %v3521_v36 = vld [vmem:[#allocation5 + $0x4ac] ss:$16 sps:$4 sm:$0xff]  }
  0xa1   :  { %1730 = vmatpush1.bf16.msra.mxu0 %v3396_v12  ;;  %1902 = vmatpush1.bf16.msra.mxu1 %v3399_v13  ;;  %v3491_v12 = vld [vmem:[#allocation5 + $0x40c] ss:$16 sps:$4 sm:$0xff]   ;;  %v3486_v13 = vld [vmem:[#allocation5 + $0x400] ss:$16 sps:$4 sm:$0xff]  }
  0xa2   :  { %1731 = vmatprep.subr.bf16.mxu0 %v3404_v14  ;;  %1903 = vmatprep.subr.bf16.mxu1 %v3407_v15  ;;  %v3489_v14 = vld [vmem:[#allocation5 + $0x408] ss:$16 sps:$4 sm:$0xff]   ;;  %v120_v15 = vpack.c.bf16 %v112_v11, %v104_v10  ;;  %v3578_v11 = vld [vmem:[#allocation5 + $0x5e4] ss:$16 sps:$4 sm:$0xff]  }
  0xa3   :  { %v3573_v10 = vld [vmem:[#allocation5 + $0x5c8] ss:$16 sps:$4 sm:$0xff]  }
  0xa5   :  { %1732 = vmatpush1.bf16.msra.mxu0 %v3402_v16  ;;  %1904 = vmatpush1.bf16.msra.mxu1 %v3405_v17  ;;  %v3494_v16 = vld [vmem:[#allocation5 + $0x424] ss:$16 sps:$4 sm:$0xff]   ;;  %v3497_v17 = vld [vmem:[#allocation5 + $0x42c] ss:$16 sps:$4 sm:$0xff]  }
  0xa6   :  { %1733 = vmatprep.subr.bf16.mxu0 %v3410_v18  ;;  %1905 = vmatprep.subr.bf16.mxu1 %v3413_v19  ;;  %v107_v18 = vld [vmem:[#allocation2 + $0x28] sm:$0xff] }
  0xa7   :  { %v115_v19 = vld [vmem:[#allocation2 + $0x68] sm:$0xff] }
  0xa9   :  { %1734 = vmatpush1.bf16.msra.mxu0 %v3408_v20  ;;  %1906 = vmatpush1.bf16.msra.mxu1 %v3411_v21  ;;  %v3492_v20 = vld [vmem:[#allocation5 + $0x420] ss:$16 sps:$4 sm:$0xff]   ;;  %v3495_v21 = vld [vmem:[#allocation5 + $0x428] ss:$16 sps:$4 sm:$0xff]  }
  0xaa   :  { %1735 = vmatprep.subr.bf16.mxu0 %v3416_v22  ;;  %1907 = vmatprep.subr.bf16.mxu1 %v3419_v23  ;;  %v123_v22 = vpack.c.bf16 %v115_v19, %v107_v18  ;;  %v3500_v23 = vld [vmem:[#allocation5 + $0x444] ss:$16 sps:$4 sm:$0xff]   ;;  %v3587_v18 = vld [vmem:[#allocation5 + $0x60c] ss:$16 sps:$4 sm:$0xff]   ;;  %v3582_v19 = vld [vmem:[#allocation5 + $0x600] ss:$16 sps:$4 sm:$0xff]  }
  0xad   :  { %1736 = vmatpush1.bf16.msra.mxu0 %v3414_v24  ;;  %1908 = vmatpush1.bf16.msra.mxu1 %v3417_v25  ;;  %v3503_v24 = vld [vmem:[#allocation5 + $0x44c] ss:$16 sps:$4 sm:$0xff]   ;;  %v3498_v25 = vld [vmem:[#allocation5 + $0x440] ss:$16 sps:$4 sm:$0xff]  }
  0xae   :  { %1737 = vmatprep.subr.bf16.mxu0 %v3422_v26  ;;  %1909 = vmatprep.subr.bf16.mxu1 %v3425_v27  ;;  %v3501_v26 = vld [vmem:[#allocation5 + $0x448] ss:$16 sps:$4 sm:$0xff]   ;;  %v3506_v27 = vld [vmem:[#allocation5 + $0x464] ss:$16 sps:$4 sm:$0xff]  }
  0xb1   :  { %1738 = vmatpush1.bf16.msra.mxu0 %v3420_v28  ;;  %1910 = vmatpush1.bf16.msra.mxu1 %v3423_v29  ;;  %v3509_v28 = vld [vmem:[#allocation5 + $0x46c] ss:$16 sps:$4 sm:$0xff]   ;;  %v3504_v29 = vld [vmem:[#allocation5 + $0x460] ss:$16 sps:$4 sm:$0xff]  }
  0xb2   :  { %1739 = vmatprep.subr.bf16.mxu0 %v3428_v30  ;;  %1911 = vmatprep.subr.bf16.mxu1 %v3431_v31  ;;  %v3507_v30 = vld [vmem:[#allocation5 + $0x468] ss:$16 sps:$4 sm:$0xff]   ;;  %v3512_v31 = vld [vmem:[#allocation5 + $0x484] ss:$16 sps:$4 sm:$0xff]  }
  0xb5   :  { %1740 = vmatpush1.bf16.msra.mxu0 %v3426_v34  ;;  %1912 = vmatpush1.bf16.msra.mxu1 %v3429_v35  ;;  %v3513_v34 = vld [vmem:[#allocation5 + $0x488] ss:$16 sps:$4 sm:$0xff]   ;;  %v3518_v35 = vld [vmem:[#allocation5 + $0x4a4] ss:$16 sps:$4 sm:$0xff]  }
  0xb6   :  { %1741 = vmatprep.subr.bf16.mxu0 %v3434_v37  ;;  %1913 = vmatprep.subr.bf16.mxu1 %v3437_v38  ;;  %v3516_v37 = vld [vmem:[#allocation5 + $0x4a0] ss:$16 sps:$4 sm:$0xff]   ;;  %v3519_v38 = vld [vmem:[#allocation5 + $0x4a8] ss:$16 sps:$4 sm:$0xff]  }
  0xb9   :  { %1742 = vmatpush1.bf16.msra.mxu0 %v3432_v39  ;;  %1914 = vmatpush1.bf16.msra.mxu1 %v3435_v40  ;;  %v3524_v39 = vld [vmem:[#allocation5 + $0x4c4] ss:$16 sps:$4 sm:$0xff]   ;;  %v3527_v40 = vld [vmem:[#allocation5 + $0x4cc] ss:$16 sps:$4 sm:$0xff]  }
  0xba   :  { %1743 = vmatprep.subr.bf16.mxu0 %v3440_v41  ;;  %1915 = vmatprep.subr.bf16.mxu1 %v3443_v42  ;;  %v3522_v41 = vld [vmem:[#allocation5 + $0x4c0] ss:$16 sps:$4 sm:$0xff]   ;;  %v3525_v42 = vld [vmem:[#allocation5 + $0x4c8] ss:$16 sps:$4 sm:$0xff]  }
  0xbd   :  { %1744 = vmatpush1.bf16.msra.mxu0 %v3438_v43  ;;  %1916 = vmatpush1.bf16.msra.mxu1 %v3441_v44  ;;  %v3530_v43 = vld [vmem:[#allocation5 + $0x4e4] ss:$16 sps:$4 sm:$0xff]   ;;  %v3533_v44 = vld [vmem:[#allocation5 + $0x4ec] ss:$16 sps:$4 sm:$0xff]  }
  0xbe   :  { %1745 = vmatprep.subr.bf16.mxu0 %v3446_v45  ;;  %1917 = vmatprep.subr.bf16.mxu1 %v3449_v46  ;;  %v3528_v45 = vld [vmem:[#allocation5 + $0x4e0] ss:$16 sps:$4 sm:$0xff]   ;;  %v3531_v46 = vld [vmem:[#allocation5 + $0x4e8] ss:$16 sps:$4 sm:$0xff]  }
  0xc1   :  { %1746 = vmatpush1.bf16.msra.mxu0 %v3444_v47  ;;  %1918 = vmatpush1.bf16.msra.mxu1 %v3447_v48  ;;  %v3536_v47 = vld [vmem:[#allocation5 + $0x504] ss:$16 sps:$4 sm:$0xff]   ;;  %v3539_v48 = vld [vmem:[#allocation5 + $0x50c] ss:$16 sps:$4 sm:$0xff]  }
  0xc2   :  { %1747 = vmatprep.subr.bf16.mxu0 %v3452_v49  ;;  %1919 = vmatprep.subr.bf16.mxu1 %v3455_v50  ;;  %v3534_v49 = vld [vmem:[#allocation5 + $0x500] ss:$16 sps:$4 sm:$0xff]   ;;  %v3537_v50 = vld [vmem:[#allocation5 + $0x508] ss:$16 sps:$4 sm:$0xff]  }
  0xc5   :  { %1748 = vmatpush1.bf16.msra.mxu0 %v3450_v51  ;;  %1920 = vmatpush1.bf16.msra.mxu1 %v3453_v52  ;;  %v3542_v51 = vld [vmem:[#allocation5 + $0x524] ss:$16 sps:$4 sm:$0xff]   ;;  %v3545_v52 = vld [vmem:[#allocation5 + $0x52c] ss:$16 sps:$4 sm:$0xff]  }
  0xc6   :  { %1749 = vmatprep.subr.bf16.mxu0 %v3458_v53  ;;  %1921 = vmatprep.subr.bf16.mxu1 %v3461_v54  ;;  %v3540_v53 = vld [vmem:[#allocation5 + $0x520] ss:$16 sps:$4 sm:$0xff]   ;;  %v3543_v54 = vld [vmem:[#allocation5 + $0x528] ss:$16 sps:$4 sm:$0xff]  }
  0xc9   :  { %1750 = vmatpush1.bf16.msra.mxu0 %v3456_v55  ;;  %1922 = vmatpush1.bf16.msra.mxu1 %v3459_v56  ;;  %v3548_v55 = vld [vmem:[#allocation5 + $0x544] ss:$16 sps:$4 sm:$0xff]   ;;  %v3551_v56 = vld [vmem:[#allocation5 + $0x54c] ss:$16 sps:$4 sm:$0xff]  }
  0xca   :  { %1751 = vmatprep.subr.bf16.mxu0 %v3464_v57  ;;  %1923 = vmatprep.subr.bf16.mxu1 %v3467_v58  ;;  %v3546_v57 = vld [vmem:[#allocation5 + $0x540] ss:$16 sps:$4 sm:$0xff]   ;;  %v3549_v58 = vld [vmem:[#allocation5 + $0x548] ss:$16 sps:$4 sm:$0xff]  }
  0xcd   :  { %1752 = vmatpush1.bf16.msra.mxu0 %v3462_v59  ;;  %1924 = vmatpush1.bf16.msra.mxu1 %v3465_v60  ;;  %v3554_v59 = vld [vmem:[#allocation5 + $0x564] ss:$16 sps:$4 sm:$0xff]   ;;  %v3557_v60 = vld [vmem:[#allocation5 + $0x56c] ss:$16 sps:$4 sm:$0xff]  }
  0xce   :  { %1753 = vmatprep.subr.bf16.mxu0 %v3470_v61  ;;  %1925 = vmatprep.subr.bf16.mxu1 %v3473_v62  ;;  %v3552_v61 = vld [vmem:[#allocation5 + $0x560] ss:$16 sps:$4 sm:$0xff]   ;;  %v3555_v62 = vld [vmem:[#allocation5 + $0x568] ss:$16 sps:$4 sm:$0xff]  }
  0xd1   :  { %1754 = vmatpush1.bf16.msra.mxu0 %v3468_v63  ;;  %1926 = vmatpush1.bf16.msra.mxu1 %v3471_v0  ;;  %v3560_v63 = vld [vmem:[#allocation5 + $0x584] ss:$16 sps:$4 sm:$0xff]   ;;  %v3563_v0 = vld [vmem:[#allocation5 + $0x58c] ss:$16 sps:$4 sm:$0xff]  }
  0xd2   :  { %1755 = vmatprep.subr.bf16.mxu0 %v3476_v1  ;;  %1927 = vmatprep.subr.bf16.mxu1 %v3479_v2  ;;  %v3558_v1 = vld [vmem:[#allocation5 + $0x580] ss:$16 sps:$4 sm:$0xff]   ;;  %v3561_v2 = vld [vmem:[#allocation5 + $0x588] ss:$16 sps:$4 sm:$0xff]  }
  0xd5   :  { %1756 = vmatpush1.bf16.msra.mxu0 %v3474_v3  ;;  %1928 = vmatpush1.bf16.msra.mxu1 %v3477_v4  ;;  %v3566_v3 = vld [vmem:[#allocation5 + $0x5a4] ss:$16 sps:$4 sm:$0xff]   ;;  %v3569_v4 = vld [vmem:[#allocation5 + $0x5ac] ss:$16 sps:$4 sm:$0xff]  }
  0xd6   :  { %1757 = vmatprep.subr.bf16.mxu0 %v3482_v5  ;;  %1929 = vmatprep.subr.bf16.mxu1 %v3485_v6  ;;  %v3564_v5 = vld [vmem:[#allocation5 + $0x5a0] ss:$16 sps:$4 sm:$0xff]   ;;  %v3567_v6 = vld [vmem:[#allocation5 + $0x5a8] ss:$16 sps:$4 sm:$0xff]  }
  0xd9   :  { %1758 = vmatpush1.bf16.msra.mxu0 %v3480_v7  ;;  %1930 = vmatpush1.bf16.msra.mxu1 %v3483_v8  ;;  %v3572_v7 = vld [vmem:[#allocation5 + $0x5c4] ss:$16 sps:$4 sm:$0xff]   ;;  %v3575_v8 = vld [vmem:[#allocation5 + $0x5cc] ss:$16 sps:$4 sm:$0xff]  }
  0xda   :  { %1770 = vmatprep.subr.bf16.mxu0 %v3488_v9  ;;  %1942 = vmatprep.subr.bf16.mxu1 %v3491_v12  ;;  %v3570_v9 = vld [vmem:[#allocation5 + $0x5c0] ss:$16 sps:$4 sm:$0xff]   ;;  %v3581_v12 = vld [vmem:[#allocation5 + $0x5ec] ss:$16 sps:$4 sm:$0xff]  }
  0xdc   :  { %1760 = vmatmul.mubr.bf16.vlgmr.msra.gmra.mrb[0].mxu0 %v120_v15  ;;  %1932 = vmatmul.mubr.bf16.vlgmr.msra.gmra.mrb[0].mxu1 %v120_v15  ;;  %v3584_v15 = vld [vmem:[#allocation5 + $0x604] ss:$16 sps:$4 sm:$0xff]  }
  0xdd   :  { %1771 = vmatpush1.bf16.msra.mxu0 %v3486_v13  ;;  %1943 = vmatpush1.bf16.msra.mxu1 %v3489_v14  ;;  %v3576_v13 = vld [vmem:[#allocation5 + $0x5e0] ss:$16 sps:$4 sm:$0xff]   ;;  %v3579_v14 = vld [vmem:[#allocation5 + $0x5e8] ss:$16 sps:$4 sm:$0xff]  }
  0xde   :  { %1772 = vmatprep.subr.bf16.mxu0 %v3494_v16  ;;  %1944 = vmatprep.subr.bf16.mxu1 %v3497_v17  ;;  %v106_v16 = vld [vmem:[#allocation2 + $0x20] sm:$0xff] }
  0xdf   :  { %1802 = vmatprep.mubr.bf16.mxu0 %v123_v22  ;;  %1974 = vmatprep.mubr.bf16.mxu1 %v123_v22  ;;  %v114_v17 = vld [vmem:[#allocation2 + $0x60] sm:$0xff]  ;;  %v109_v22 = vld [vmem:[#allocation2 + $0x38] sm:$0xff] }
  0xe1   :  { %1773 = vmatpush1.bf16.msra.mxu0 %v3492_v20  ;;  %1945 = vmatpush1.bf16.msra.mxu1 %v3495_v21  ;;  %v3585_v20 = vld [vmem:[#allocation5 + $0x608] ss:$16 sps:$4 sm:$0xff]   ;;  %v122_v21 = vpack.c.bf16 %v114_v17, %v106_v16  ;;  %v3674_v17 = vld [vmem:[#allocation5 + $0x7e4] ss:$16 sps:$4 sm:$0xff]  }
  0xe2   :  { %1774 = vmatprep.subr.bf16.mxu0 %v3500_v23  ;;  %1946 = vmatprep.subr.bf16.mxu1 %v3503_v24  ;;  %v117_v23 = vld [vmem:[#allocation2 + $0x78] sm:$0xff]  ;;  %v3590_v24 = vld [vmem:[#allocation5 + $0x624] ss:$16 sps:$4 sm:$0xff]  }
  0xe3   :  { %v3669_v16 = vld [vmem:[#allocation5 + $0x7c8] ss:$16 sps:$4 sm:$0xff]  }
  0xe5   :  { %1775 = vmatpush1.bf16.msra.mxu0 %v3498_v25  ;;  %1947 = vmatpush1.bf16.msra.mxu1 %v3501_v26  ;;  %v3593_v25 = vld [vmem:[#allocation5 + $0x62c] ss:$16 sps:$4 sm:$0xff]   ;;  %v3588_v26 = vld [vmem:[#allocation5 + $0x620] ss:$16 sps:$4 sm:$0xff]  }
  0xe6   :  { %1776 = vmatprep.subr.bf16.mxu0 %v3506_v27  ;;  %1948 = vmatprep.subr.bf16.mxu1 %v3509_v28  ;;  %v3591_v27 = vld [vmem:[#allocation5 + $0x628] ss:$16 sps:$4 sm:$0xff]   ;;  %v125_v28 = vpack.c.bf16 %v117_v23, %v109_v22  ;;  %v116_v22 = vld [vmem:[#allocation2 + $0x70] sm:$0xff]  ;;  %v3680_v23 = vld [vmem:[#allocation7 + $0x4] ss:$8 sps:$4 sm:$0xff]  }
  0xe9   :  { %1777 = vmatpush1.bf16.msra.mxu0 %v3504_v29  ;;  %1949 = vmatpush1.bf16.msra.mxu1 %v3507_v30  ;;  %v3596_v29 = vld [vmem:[#allocation5 + $0x644] ss:$16 sps:$4 sm:$0xff]   ;;  %v3599_v30 = vld [vmem:[#allocation5 + $0x64c] ss:$16 sps:$4 sm:$0xff]  }
  0xea   :  { %1778 = vmatprep.subr.bf16.mxu0 %v3512_v31  ;;  %1950 = vmatprep.subr.bf16.mxu1 %v3515_v32  ;;  %v3594_v31 = vld [vmem:[#allocation5 + $0x640] ss:$16 sps:$4 sm:$0xff]   ;;  %v3597_v32 = vld [vmem:[#allocation5 + $0x648] ss:$16 sps:$4 sm:$0xff]  }
  0xed   :  { %1779 = vmatpush1.bf16.msra.mxu0 %v3510_v33  ;;  %1951 = vmatpush1.bf16.msra.mxu1 %v3513_v34  ;;  %v3602_v33 = vld [vmem:[#allocation5 + $0x664] ss:$16 sps:$4 sm:$0xff]   ;;  %v3605_v34 = vld [vmem:[#allocation5 + $0x66c] ss:$16 sps:$4 sm:$0xff]  }
  0xee   :  { %1780 = vmatprep.subr.bf16.mxu0 %v3518_v35  ;;  %1952 = vmatprep.subr.bf16.mxu1 %v3521_v36  ;;  %v3600_v35 = vld [vmem:[#allocation5 + $0x660] ss:$16 sps:$4 sm:$0xff]   ;;  %v3603_v36 = vld [vmem:[#allocation5 + $0x668] ss:$16 sps:$4 sm:$0xff]  }
  0xf1   :  { %1781 = vmatpush1.bf16.msra.mxu0 %v3516_v37  ;;  %1953 = vmatpush1.bf16.msra.mxu1 %v3519_v38  ;;  %v3608_v37 = vld [vmem:[#allocation5 + $0x684] ss:$16 sps:$4 sm:$0xff]   ;;  %v3611_v38 = vld [vmem:[#allocation5 + $0x68c] ss:$16 sps:$4 sm:$0xff]  }
  0xf2   :  { %1782 = vmatprep.subr.bf16.mxu0 %v3524_v39  ;;  %1954 = vmatprep.subr.bf16.mxu1 %v3527_v40  ;;  %v3606_v39 = vld [vmem:[#allocation5 + $0x680] ss:$16 sps:$4 sm:$0xff]   ;;  %v3609_v40 = vld [vmem:[#allocation5 + $0x688] ss:$16 sps:$4 sm:$0xff]  }
  0xf5   :  { %1783 = vmatpush1.bf16.msra.mxu0 %v3522_v41  ;;  %1955 = vmatpush1.bf16.msra.mxu1 %v3525_v42  ;;  %v3614_v41 = vld [vmem:[#allocation5 + $0x6a4] ss:$16 sps:$4 sm:$0xff]   ;;  %v3617_v42 = vld [vmem:[#allocation5 + $0x6ac] ss:$16 sps:$4 sm:$0xff]  }
  0xf6   :  { %1784 = vmatprep.subr.bf16.mxu0 %v3530_v43  ;;  %1956 = vmatprep.subr.bf16.mxu1 %v3533_v44  ;;  %v3612_v43 = vld [vmem:[#allocation5 + $0x6a0] ss:$16 sps:$4 sm:$0xff]   ;;  %v3615_v44 = vld [vmem:[#allocation5 + $0x6a8] ss:$16 sps:$4 sm:$0xff]  }
  0xf9   :  { %1785 = vmatpush1.bf16.msra.mxu0 %v3528_v45  ;;  %1957 = vmatpush1.bf16.msra.mxu1 %v3531_v46  ;;  %v3620_v45 = vld [vmem:[#allocation5 + $0x6c4] ss:$16 sps:$4 sm:$0xff]   ;;  %v3623_v46 = vld [vmem:[#allocation5 + $0x6cc] ss:$16 sps:$4 sm:$0xff]  }
  0xfa   :  { %1786 = vmatprep.subr.bf16.mxu0 %v3536_v47  ;;  %1958 = vmatprep.subr.bf16.mxu1 %v3539_v48  ;;  %v3618_v47 = vld [vmem:[#allocation5 + $0x6c0] ss:$16 sps:$4 sm:$0xff]   ;;  %v3621_v48 = vld [vmem:[#allocation5 + $0x6c8] ss:$16 sps:$4 sm:$0xff]  }
  0xfd   :  { %1787 = vmatpush1.bf16.msra.mxu0 %v3534_v49  ;;  %1959 = vmatpush1.bf16.msra.mxu1 %v3537_v50  ;;  %v3626_v49 = vld [vmem:[#allocation5 + $0x6e4] ss:$16 sps:$4 sm:$0xff]   ;;  %v3629_v50 = vld [vmem:[#allocation5 + $0x6ec] ss:$16 sps:$4 sm:$0xff]  }
  0xfe   :  { %1788 = vmatprep.subr.bf16.mxu0 %v3542_v51  ;;  %1960 = vmatprep.subr.bf16.mxu1 %v3545_v52  ;;  %v3624_v51 = vld [vmem:[#allocation5 + $0x6e0] ss:$16 sps:$4 sm:$0xff]   ;;  %v3627_v52 = vld [vmem:[#allocation5 + $0x6e8] ss:$16 sps:$4 sm:$0xff]  }
 0x101   :  { %1789 = vmatpush1.bf16.msra.mxu0 %v3540_v53  ;;  %1961 = vmatpush1.bf16.msra.mxu1 %v3543_v54  ;;  %v3632_v53 = vld [vmem:[#allocation5 + $0x704] ss:$16 sps:$4 sm:$0xff]   ;;  %v3635_v54 = vld [vmem:[#allocation5 + $0x70c] ss:$16 sps:$4 sm:$0xff]  }
 0x102   :  { %1790 = vmatprep.subr.bf16.mxu0 %v3548_v55  ;;  %1962 = vmatprep.subr.bf16.mxu1 %v3551_v56  ;;  %v3630_v55 = vld [vmem:[#allocation5 + $0x700] ss:$16 sps:$4 sm:$0xff]   ;;  %v3633_v56 = vld [vmem:[#allocation5 + $0x708] ss:$16 sps:$4 sm:$0xff]  }
 0x105   :  { %1791 = vmatpush1.bf16.msra.mxu0 %v3546_v57  ;;  %1963 = vmatpush1.bf16.msra.mxu1 %v3549_v58  ;;  %v3638_v57 = vld [vmem:[#allocation5 + $0x724] ss:$16 sps:$4 sm:$0xff]   ;;  %v3641_v58 = vld [vmem:[#allocation5 + $0x72c] ss:$16 sps:$4 sm:$0xff]  }
 0x106   :  { %1792 = vmatprep.subr.bf16.mxu0 %v3554_v59  ;;  %1964 = vmatprep.subr.bf16.mxu1 %v3557_v60  ;;  %v3636_v59 = vld [vmem:[#allocation5 + $0x720] ss:$16 sps:$4 sm:$0xff]   ;;  %v3639_v60 = vld [vmem:[#allocation5 + $0x728] ss:$16 sps:$4 sm:$0xff]  }
 0x109   :  { %1793 = vmatpush1.bf16.msra.mxu0 %v3552_v61  ;;  %1965 = vmatpush1.bf16.msra.mxu1 %v3555_v62  ;;  %v3644_v61 = vld [vmem:[#allocation5 + $0x744] ss:$16 sps:$4 sm:$0xff]   ;;  %v3647_v62 = vld [vmem:[#allocation5 + $0x74c] ss:$16 sps:$4 sm:$0xff]  }
 0x10a   :  { %1794 = vmatprep.subr.bf16.mxu0 %v3560_v63  ;;  %1966 = vmatprep.subr.bf16.mxu1 %v3563_v0  ;;  %v3642_v63 = vld [vmem:[#allocation5 + $0x740] ss:$16 sps:$4 sm:$0xff]   ;;  %v3645_v0 = vld [vmem:[#allocation5 + $0x748] ss:$16 sps:$4 sm:$0xff]  }
 0x10d   :  { %1795 = vmatpush1.bf16.msra.mxu0 %v3558_v1  ;;  %1967 = vmatpush1.bf16.msra.mxu1 %v3561_v2  ;;  %v3650_v1 = vld [vmem:[#allocation5 + $0x764] ss:$16 sps:$4 sm:$0xff]   ;;  %v3653_v2 = vld [vmem:[#allocation5 + $0x76c] ss:$16 sps:$4 sm:$0xff]  }
 0x10e   :  { %1796 = vmatprep.subr.bf16.mxu0 %v3566_v3  ;;  %1968 = vmatprep.subr.bf16.mxu1 %v3569_v4  ;;  %v3648_v3 = vld [vmem:[#allocation5 + $0x760] ss:$16 sps:$4 sm:$0xff]   ;;  %v3651_v4 = vld [vmem:[#allocation5 + $0x768] ss:$16 sps:$4 sm:$0xff]  }
 0x111   :  { %1797 = vmatpush1.bf16.msra.mxu0 %v3564_v5  ;;  %1969 = vmatpush1.bf16.msra.mxu1 %v3567_v6  ;;  %v3656_v5 = vld [vmem:[#allocation5 + $0x784] ss:$16 sps:$4 sm:$0xff]   ;;  %v3659_v6 = vld [vmem:[#allocation5 + $0x78c] ss:$16 sps:$4 sm:$0xff]  }
 0x112   :  { %1798 = vmatprep.subr.bf16.mxu0 %v3572_v7  ;;  %1970 = vmatprep.subr.bf16.mxu1 %v3575_v8  ;;  %v3654_v7 = vld [vmem:[#allocation5 + $0x780] ss:$16 sps:$4 sm:$0xff]   ;;  %v3657_v8 = vld [vmem:[#allocation5 + $0x788] ss:$16 sps:$4 sm:$0xff]  }
 0x115   :  { %1799 = vmatpush1.bf16.msra.mxu0 %v3570_v9  ;;  %1971 = vmatpush1.bf16.msra.mxu1 %v3573_v10  ;;  %v3662_v9 = vld [vmem:[#allocation5 + $0x7a4] ss:$16 sps:$4 sm:$0xff]   ;;  %v3665_v10 = vld [vmem:[#allocation5 + $0x7ac] ss:$16 sps:$4 sm:$0xff]  }
 0x116   :  { %1800 = vmatprep.subr.bf16.mxu0 %v3578_v11  ;;  %1972 = vmatprep.subr.bf16.mxu1 %v3581_v12  ;;  %v3660_v11 = vld [vmem:[#allocation5 + $0x7a0] ss:$16 sps:$4 sm:$0xff]   ;;  %v3663_v12 = vld [vmem:[#allocation5 + $0x7a8] ss:$16 sps:$4 sm:$0xff]  }
 0x119   :  { %1801 = vmatpush1.bf16.msra.mxu0 %v3576_v13  ;;  %1973 = vmatpush1.bf16.msra.mxu1 %v3579_v14  ;;  %v3668_v13 = vld [vmem:[#allocation5 + $0x7c4] ss:$16 sps:$4 sm:$0xff]   ;;  %v3671_v14 = vld [vmem:[#allocation5 + $0x7cc] ss:$16 sps:$4 sm:$0xff]  }
 0x11a   :  { %1813 = vmatprep.subr.bf16.mxu0 %v3584_v15  ;;  %1985 = vmatprep.subr.bf16.mxu1 %v3587_v18  ;;  %v3666_v15 = vld [vmem:[#allocation5 + $0x7c0] ss:$16 sps:$4 sm:$0xff]   ;;  %v3677_v18 = vld [vmem:[#allocation5 + $0x7ec] ss:$16 sps:$4 sm:$0xff]  }
 0x11c   :  { %1803 = vmatmul.mubr.bf16.vlgmr.msra.gmra.mrb[0].mxu0 %v122_v21  ;;  %1975 = vmatmul.mubr.bf16.vlgmr.msra.gmra.mrb[0].mxu1 %v122_v21  ;;  %v108_v21 = vld [vmem:[#allocation2 + $0x30] sm:$0xff] }
 0x11d   :  { %1814 = vmatpush1.bf16.msra.mxu0 %v3582_v19  ;;  %1986 = vmatpush1.bf16.msra.mxu1 %v3585_v20  ;;  %v3672_v19 = vld [vmem:[#allocation5 + $0x7e0] ss:$16 sps:$4 sm:$0xff]   ;;  %v3675_v20 = vld [vmem:[#allocation5 + $0x7e8] ss:$16 sps:$4 sm:$0xff]  }
 0x11e   :  { %1815 = vmatprep.subr.bf16.mxu0 %v3590_v24  ;;  %1987 = vmatprep.subr.bf16.mxu1 %v3593_v25  ;;  %v124_v24 = vpack.c.bf16 %v116_v22, %v108_v21  ;;  %v3678_v25 = vld [vmem:[#allocation7] ss:$8 sps:$4 sm:$0xff]  }
 0x11f   :  { %1845 = vmatprep.mubr.bf16.mxu0 %v125_v28  ;;  %2017 = vmatprep.mubr.bf16.mxu1 %v125_v28  ;;  %v3686_v28 = vld [vmem:[#allocation7 + $0x24] ss:$8 sps:$4 sm:$0xff]  }
 0x121   :  { %1816 = vmatpush1.bf16.msra.mxu0 %v3588_v26  ;;  %1988 = vmatpush1.bf16.msra.mxu1 %v3591_v27  ;;  %v3683_v26 = vld [vmem:[#allocation7 + $0x14] ss:$8 sps:$4 sm:$0xff]   ;;  %v3681_v27 = vld [vmem:[#allocation7 + $0x10] ss:$8 sps:$4 sm:$0xff]  }
 0x122   :  { %1817 = vmatprep.subr.bf16.mxu0 %v3596_v29  ;;  %1989 = vmatprep.subr.bf16.mxu1 %v3599_v30  ;;  %v3684_v29 = vld [vmem:[#allocation7 + $0x20] ss:$8 sps:$4 sm:$0xff]   ;;  %v3689_v30 = vld [vmem:[#allocation7 + $0x34] ss:$8 sps:$4 sm:$0xff]  }
 0x125   :  { %1818 = vmatpush1.bf16.msra.mxu0 %v3594_v31  ;;  %1990 = vmatpush1.bf16.msra.mxu1 %v3597_v32  ;;  %v3687_v31 = vld [vmem:[#allocation7 + $0x30] ss:$8 sps:$4 sm:$0xff]   ;;  %v3692_v32 = vld [vmem:[#allocation7 + $0x44] ss:$8 sps:$4 sm:$0xff]  }
 0x126   :  { %1819 = vmatprep.subr.bf16.mxu0 %v3602_v33  ;;  %1991 = vmatprep.subr.bf16.mxu1 %v3605_v34  ;;  %v3690_v33 = vld [vmem:[#allocation7 + $0x40] ss:$8 sps:$4 sm:$0xff]   ;;  %v3695_v34 = vld [vmem:[#allocation7 + $0x54] ss:$8 sps:$4 sm:$0xff]  }
 0x129   :  { %1820 = vmatpush1.bf16.msra.mxu0 %v3600_v35  ;;  %1992 = vmatpush1.bf16.msra.mxu1 %v3603_v36  ;;  %v3693_v35 = vld [vmem:[#allocation7 + $0x50] ss:$8 sps:$4 sm:$0xff]   ;;  %v3698_v36 = vld [vmem:[#allocation7 + $0x64] ss:$8 sps:$4 sm:$0xff]  }
 0x12a   :  { %1821 = vmatprep.subr.bf16.mxu0 %v3608_v37  ;;  %1993 = vmatprep.subr.bf16.mxu1 %v3611_v38  ;;  %v3696_v37 = vld [vmem:[#allocation7 + $0x60] ss:$8 sps:$4 sm:$0xff]   ;;  %v3701_v38 = vld [vmem:[#allocation7 + $0x74] ss:$8 sps:$4 sm:$0xff]  }
 0x12d   :  { %1822 = vmatpush1.bf16.msra.mxu0 %v3606_v39  ;;  %1994 = vmatpush1.bf16.msra.mxu1 %v3609_v40  ;;  %v3699_v39 = vld [vmem:[#allocation7 + $0x70] ss:$8 sps:$4 sm:$0xff]   ;;  %v3704_v40 = vld [vmem:[#allocation7 + $0x84] ss:$8 sps:$4 sm:$0xff]  }
 0x12e   :  { %1823 = vmatprep.subr.bf16.mxu0 %v3614_v41  ;;  %1995 = vmatprep.subr.bf16.mxu1 %v3617_v42  ;;  %v3702_v41 = vld [vmem:[#allocation7 + $0x80] ss:$8 sps:$4 sm:$0xff]   ;;  %v3707_v42 = vld [vmem:[#allocation7 + $0x94] ss:$8 sps:$4 sm:$0xff]  }
 0x131   :  { %1824 = vmatpush1.bf16.msra.mxu0 %v3612_v43  ;;  %1996 = vmatpush1.bf16.msra.mxu1 %v3615_v44  ;;  %v3705_v43 = vld [vmem:[#allocation7 + $0x90] ss:$8 sps:$4 sm:$0xff]   ;;  %v3710_v44 = vld [vmem:[#allocation7 + $0xa4] ss:$8 sps:$4 sm:$0xff]  }
 0x132   :  { %1825 = vmatprep.subr.bf16.mxu0 %v3620_v45  ;;  %1997 = vmatprep.subr.bf16.mxu1 %v3623_v46  ;;  %v3708_v45 = vld [vmem:[#allocation7 + $0xa0] ss:$8 sps:$4 sm:$0xff]   ;;  %v3713_v46 = vld [vmem:[#allocation7 + $0xb4] ss:$8 sps:$4 sm:$0xff]  }
 0x135   :  { %1826 = vmatpush1.bf16.msra.mxu0 %v3618_v47  ;;  %1998 = vmatpush1.bf16.msra.mxu1 %v3621_v48  ;;  %v3711_v47 = vld [vmem:[#allocation7 + $0xb0] ss:$8 sps:$4 sm:$0xff]   ;;  %v3716_v48 = vld [vmem:[#allocation7 + $0xc4] ss:$8 sps:$4 sm:$0xff]  }
 0x136   :  { %1827 = vmatprep.subr.bf16.mxu0 %v3626_v49  ;;  %1999 = vmatprep.subr.bf16.mxu1 %v3629_v50  ;;  %v3714_v49 = vld [vmem:[#allocation7 + $0xc0] ss:$8 sps:$4 sm:$0xff]   ;;  %v3719_v50 = vld [vmem:[#allocation7 + $0xd4] ss:$8 sps:$4 sm:$0xff]  }
 0x139   :  { %1828 = vmatpush1.bf16.msra.mxu0 %v3624_v51  ;;  %2000 = vmatpush1.bf16.msra.mxu1 %v3627_v52  ;;  %v3717_v51 = vld [vmem:[#allocation7 + $0xd0] ss:$8 sps:$4 sm:$0xff]   ;;  %v3722_v52 = vld [vmem:[#allocation7 + $0xe4] ss:$8 sps:$4 sm:$0xff]  }
 0x13a   :  { %1829 = vmatprep.subr.bf16.mxu0 %v3632_v53  ;;  %2001 = vmatprep.subr.bf16.mxu1 %v3635_v54  ;;  %v3720_v53 = vld [vmem:[#allocation7 + $0xe0] ss:$8 sps:$4 sm:$0xff]   ;;  %v3725_v54 = vld [vmem:[#allocation7 + $0xf4] ss:$8 sps:$4 sm:$0xff]  }
 0x13d   :  { %1830 = vmatpush1.bf16.msra.mxu0 %v3630_v55  ;;  %2002 = vmatpush1.bf16.msra.mxu1 %v3633_v56  ;;  %v3723_v55 = vld [vmem:[#allocation7 + $0xf0] ss:$8 sps:$4 sm:$0xff]   ;;  %v3728_v56 = vld [vmem:[#allocation7 + $0x104] ss:$8 sps:$4 sm:$0xff]  }
 0x13e   :  { %1831 = vmatprep.subr.bf16.mxu0 %v3638_v57  ;;  %2003 = vmatprep.subr.bf16.mxu1 %v3641_v58  ;;  %v3774_v57 = vld [vmem:[#allocation8 + $0x40] sm:$0xff]  }
 0x13f   :  { %v3775_v58 = vld [vmem:[#allocation8] sm:$0xff]  }
 0x141   :  { %1832 = vmatpush1.bf16.msra.mxu0 %v3636_v59  ;;  %2004 = vmatpush1.bf16.msra.mxu1 %v3639_v60  ;;  %v3776_v59 = vld [vmem:[#allocation8 + $0x48] sm:$0xff]  }
 0x142   :  { %1833 = vmatprep.subr.bf16.mxu0 %v3644_v61  ;;  %2005 = vmatprep.subr.bf16.mxu1 %v3647_v62  ;;  %v3777_v60 = vld [vmem:[#allocation8 + $0x8] sm:$0xff]   ;;  %v3778_v61 = vld [vmem:[#allocation8 + $0x50] sm:$0xff]  }
 0x143   :  { %v3779_v62 = vld [vmem:[#allocation8 + $0x10] sm:$0xff]  }
 0x145   :  { %1834 = vmatpush1.bf16.msra.mxu0 %v3642_v63  ;;  %2006 = vmatpush1.bf16.msra.mxu1 %v3645_v0  ;;  %v3780_v63 = vld [vmem:[#allocation8 + $0x58] sm:$0xff]  }
 0x146   :  { %1835 = vmatprep.subr.bf16.mxu0 %v3650_v1  ;;  %2007 = vmatprep.subr.bf16.mxu1 %v3653_v2  ;;  %v3781_v0 = vld [vmem:[#allocation8 + $0x18] sm:$0xff]   ;;  %v3782_v1 = vld [vmem:[#allocation8 + $0x60] sm:$0xff]  }
 0x147   :  { %v3783_v2 = vld [vmem:[#allocation8 + $0x20] sm:$0xff]  }
 0x149   :  { %1836 = vmatpush1.bf16.msra.mxu0 %v3648_v3  ;;  %2008 = vmatpush1.bf16.msra.mxu1 %v3651_v4  ;;  %v3784_v3 = vld [vmem:[#allocation8 + $0x68] sm:$0xff]   ;;  %v384_v4 = vlaneseq }
 0x14a   :  { %1837 = vmatprep.subr.bf16.mxu0 %v3656_v5  ;;  %2009 = vmatprep.subr.bf16.mxu1 %v3659_v6 }
 0x14b   :  { %v4073_v5 = vshrl.u32 %v384_v4, 7  ;;  %v3767_v4 = vld [vmem:[#allocation7 + $0x1d4] ss:$8 sps:$4 sm:$0xff]  }
 0x14d   :  { %1838 = vmatpush1.bf16.msra.mxu0 %v3654_v7  ;;  %2010 = vmatpush1.bf16.msra.mxu1 %v3657_v8  ;;  %v386_v6 = vsub.s32 0, %v4073_v5  ;;  %v394_v7 = vsub.s32 2, %v4073_v5  ;;  %v382_v8 = vld [vmem:[%s4119_s2] sm:$0xf] }
 0x14e   :  { %1839 = vmatprep.subr.bf16.mxu0 %v3662_v9  ;;  %2011 = vmatprep.subr.bf16.mxu1 %v3665_v10  ;;  %v390_v9 = vsub.s32 1, %v4073_v5  ;;  %v398_v10 = vsub.s32 3, %v4073_v5  ;;  %v3791_v5 = vld [vmem:[#allocation10 + $0x8] sm:$0xff]  }
 0x151   :  { %1840 = vmatpush1.bf16.msra.mxu0 %v3660_v11  ;;  %2012 = vmatpush1.bf16.msra.mxu1 %v3663_v12  ;;  %v387_v11 = vrot.slane %v382_v8, %v386_v6  ;;  %v395_v12 = vrot.slane %v382_v8, %v394_v7  ;;  %v3765_v7 = vld [vmem:[#allocation7 + $0x1d0] ss:$8 sps:$4 sm:$0xff]  }
 0x152   :  { %1841 = vmatprep.subr.bf16.mxu0 %v3668_v13  ;;  %2013 = vmatprep.subr.bf16.mxu1 %v3671_v14  ;;  %v391_v13 = vrot.slane %v382_v8, %v390_v9  ;;  %v399_v14 = vrot.slane %v382_v8, %v398_v10  ;;  %v3770_v8 = vld [vmem:[#allocation7 + $0x1e4] ss:$8 sps:$4 sm:$0xff]   ;;  %v3768_v10 = vld [vmem:[#allocation7 + $0x1e0] ss:$8 sps:$4 sm:$0xff]  }
 0x155   :  { %1842 = vmatpush1.bf16.msra.mxu0 %v3666_v15  ;;  %2014 = vmatpush1.bf16.msra.mxu1 %v3669_v16 }
 0x156   :  { %1843 = vmatprep.subr.bf16.mxu0 %v3674_v17  ;;  %2015 = vmatprep.subr.bf16.mxu1 %v3677_v18 }
 0x159   :  { %1844 = vmatpush1.bf16.msra.mxu0 %v3672_v19  ;;  %2016 = vmatpush1.bf16.msra.mxu1 %v3675_v20 }
 0x15a   :  { %2436 = vmatprep.subr.bf16.mxu0 %v3680_v23  ;;  %3188 = vmatprep.subr.bf16.mxu1 %v3774_v57  ;;  %v3747_v57 = vld [vmem:[#allocation7 + $0x170] ss:$8 sps:$4 sm:$0xff]  }
 0x15c   :  { %1846 = vmatmul.mubr.bf16.vlgmr.msra.gmra.mrb[0].mxu0 %v124_v24  ;;  %2018 = vmatmul.mubr.bf16.vlgmr.msra.gmra.mrb[0].mxu1 %v124_v24 }
 0x15d   :  { %2437 = vmatpush1.bf16.msra.mxu0 %v3678_v25  ;;  %3189 = vmatpush3.bf16.msra.mxu1 %v3775_v58  ;;  %v3752_v58 = vld [vmem:[#allocation7 + $0x184] ss:$8 sps:$4 sm:$0xff]  }
 0x15e   :  { %2438 = vmatprep.subr.bf16.mxu0 %v3683_v26  ;;  %3190 = vmatprep.subr.bf16.mxu1 %v3776_v59  ;;  %v3750_v59 = vld [vmem:[#allocation7 + $0x180] ss:$8 sps:$4 sm:$0xff]  }
 0x161   :  { %2439 = vmatpush1.bf16.msra.mxu0 %v3681_v27  ;;  %3191 = vmatpush3.bf16.msra.mxu1 %v3777_v60  ;;  %v3755_v60 = vld [vmem:[#allocation7 + $0x194] ss:$8 sps:$4 sm:$0xff]  }
 0x162   :  { %2440 = vmatprep.subr.bf16.mxu0 %v3686_v28  ;;  %3192 = vmatprep.subr.bf16.mxu1 %v3778_v61  ;;  %v3753_v61 = vld [vmem:[#allocation7 + $0x190] ss:$8 sps:$4 sm:$0xff]  }
 0x165   :  { %2441 = vmatpush1.bf16.msra.mxu0 %v3684_v29  ;;  %3193 = vmatpush3.bf16.msra.mxu1 %v3779_v62  ;;  %v3758_v62 = vld [vmem:[#allocation7 + $0x1a4] ss:$8 sps:$4 sm:$0xff]  }
 0x166   :  { %2442 = vmatprep.subr.bf16.mxu0 %v3689_v30  ;;  %3194 = vmatprep.subr.bf16.mxu1 %v3780_v63  ;;  %v3756_v63 = vld [vmem:[#allocation7 + $0x1a0] ss:$8 sps:$4 sm:$0xff]  }
 0x169   :  { %2443 = vmatpush1.bf16.msra.mxu0 %v3687_v31  ;;  %3195 = vmatpush3.bf16.msra.mxu1 %v3781_v0  ;;  %v3761_v0 = vld [vmem:[#allocation7 + $0x1b4] ss:$8 sps:$4 sm:$0xff]  }
 0x16a   :  { %2444 = vmatprep.subr.bf16.mxu0 %v3692_v32  ;;  %3196 = vmatprep.subr.bf16.mxu1 %v3782_v1  ;;  %v3759_v1 = vld [vmem:[#allocation7 + $0x1b0] ss:$8 sps:$4 sm:$0xff]  }
 0x16d   :  { %2445 = vmatpush1.bf16.msra.mxu0 %v3690_v33  ;;  %3197 = vmatpush3.bf16.msra.mxu1 %v3783_v2  ;;  %v3764_v2 = vld [vmem:[#allocation7 + $0x1c4] ss:$8 sps:$4 sm:$0xff]  }
 0x16e   :  { %2446 = vmatprep.subr.bf16.mxu0 %v3695_v34  ;;  %3198 = vmatprep.subr.bf16.mxu1 %v3784_v3  ;;  %v3762_v3 = vld [vmem:[#allocation7 + $0x1c0] ss:$8 sps:$4 sm:$0xff]  }
 0x171   :  { %2447 = vmatpush1.bf16.msra.mxu0 %v3693_v35 }
 0x172   :  { %2448 = vmatprep.subr.bf16.mxu0 %v3698_v36 }
 0x175   :  { %2449 = vmatpush1.bf16.msra.mxu0 %v3696_v37 }
 0x176   :  { %2450 = vmatprep.subr.bf16.mxu0 %v3701_v38 }
 0x179   :  { %2451 = vmatpush1.bf16.msra.mxu0 %v3699_v39 }
 0x17a   :  { %2452 = vmatprep.subr.bf16.mxu0 %v3704_v40 }
 0x17d   :  { %2453 = vmatpush1.bf16.msra.mxu0 %v3702_v41 }
 0x17e   :  { %2454 = vmatprep.subr.bf16.mxu0 %v3707_v42 }
 0x181   :  { %2455 = vmatpush1.bf16.msra.mxu0 %v3705_v43  ;;  %v3726_v43 = vld [vmem:[#allocation7 + $0x100] ss:$8 sps:$4 sm:$0xff]  }
 0x182   :  { %2456 = vmatprep.subr.bf16.mxu0 %v3710_v44  ;;  %v3731_v44 = vld [vmem:[#allocation7 + $0x114] ss:$8 sps:$4 sm:$0xff]  }
 0x185   :  { %2457 = vmatpush1.bf16.msra.mxu0 %v3708_v45  ;;  %v3729_v45 = vld [vmem:[#allocation7 + $0x110] ss:$8 sps:$4 sm:$0xff]  }
 0x186   :  { %2458 = vmatprep.subr.bf16.mxu0 %v3713_v46  ;;  %v3734_v46 = vld [vmem:[#allocation7 + $0x124] ss:$8 sps:$4 sm:$0xff]  }
 0x189   :  { %2459 = vmatpush1.bf16.msra.mxu0 %v3711_v47  ;;  %v3732_v47 = vld [vmem:[#allocation7 + $0x120] ss:$8 sps:$4 sm:$0xff]  }
 0x18a   :  { %2460 = vmatprep.subr.bf16.mxu0 %v3716_v48  ;;  %v3737_v48 = vld [vmem:[#allocation7 + $0x134] ss:$8 sps:$4 sm:$0xff]  }
 0x18d   :  { %2461 = vmatpush1.bf16.msra.mxu0 %v3714_v49  ;;  %v3735_v49 = vld [vmem:[#allocation7 + $0x130] ss:$8 sps:$4 sm:$0xff]  }
 0x18e   :  { %2462 = vmatprep.subr.bf16.mxu0 %v3719_v50  ;;  %v3740_v50 = vld [vmem:[#allocation7 + $0x144] ss:$8 sps:$4 sm:$0xff]  }
 0x191   :  { %2463 = vmatpush1.bf16.msra.mxu0 %v3717_v51  ;;  %v3738_v51 = vld [vmem:[#allocation7 + $0x140] ss:$8 sps:$4 sm:$0xff]  }
 0x192   :  { %2464 = vmatprep.subr.bf16.mxu0 %v3722_v52  ;;  %v3743_v52 = vld [vmem:[#allocation7 + $0x154] ss:$8 sps:$4 sm:$0xff]  }
 0x195   :  { %2465 = vmatpush1.bf16.msra.mxu0 %v3720_v53  ;;  %v3741_v53 = vld [vmem:[#allocation7 + $0x150] ss:$8 sps:$4 sm:$0xff]  }
 0x196   :  { %2466 = vmatprep.subr.bf16.mxu0 %v3725_v54  ;;  %v3746_v54 = vld [vmem:[#allocation7 + $0x164] ss:$8 sps:$4 sm:$0xff]  }
 0x199   :  { %2467 = vmatpush1.bf16.msra.mxu0 %v3723_v55  ;;  %v3744_v55 = vld [vmem:[#allocation7 + $0x160] ss:$8 sps:$4 sm:$0xff]  }
 0x19a   :  { %2479 = vmatprep.subr.bf16.mxu0 %v3728_v56  ;;  %v3749_v56 = vld [vmem:[#allocation7 + $0x174] ss:$8 sps:$4 sm:$0xff]  }
 0x22f   :  { %v1847_v15 = vpop.f32.mrb[0].mxu0  ;;  %v2019_v16 = vpop.f32.mrb[0].mxu1 }
 0x230   :  { %v3239_v17 = vadd.f32 %v1847_v15, %v387_v11  ;;  %v3243_v18 = vadd.f32 %v2019_v16, %v395_v12  ;;  %v1849_v19 = vpop.f32.mrb[1].mxu0  ;;  %v2021_v20 = vpop.f32.mrb[1].mxu1  ;;  %v3787_v15 = vld [vmem:[#allocation8 + $0x30] sm:$0xff]   ;;  %v3788_v16 = vld [vmem:[#allocation8 + $0x78] sm:$0xff]  }
 0x231   :  { %v3240_v21 = vadd.f32 %v1849_v19, %v391_v13  ;;  %v3244_v22 = vadd.f32 %v2021_v20, %v399_v14  ;;  %v1851_v23 = vpop.f32.mrb[2].mxu0  ;;  %v2023_v24 = vpop.f32.mrb[2].mxu1  ;;  %v2104_v19 = vld [vmem:[%s4121_s4] sm:$0x3] }
 0x232   :  { %v3241_v25 = vadd.f32 %v1851_v23, %v387_v11  ;;  %v3245_v26 = vadd.f32 %v2023_v24, %v395_v12  ;;  %v1853_v27 = vpop.f32.mrb[3].mxu0  ;;  %v2025_v28 = vpop.f32.mrb[3].mxu1  ;;  %v2028_v31 = vmax.f32 %v3239_v17, 0.0  ;;  %v2030_v32 = vmax.f32 %v3243_v18, 0.0  ;;  %v3773_v11 = vld [vmem:[#allocation7 + $0x1f4] ss:$8 sps:$4 sm:$0xff]  }
 0x233   :  { %v3242_v29 = vadd.f32 %v1853_v27, %v391_v13  ;;  %v3246_v30 = vadd.f32 %v2025_v28, %v399_v14  ;;  %v2029_v35 = vmax.f32 %v3240_v21, 0.0  ;;  %v2031_v36 = vmax.f32 %v3244_v22, 0.0  ;;  %v3771_v12 = vld [vmem:[#allocation7 + $0x1f0] ss:$8 sps:$4 sm:$0xff]   ;;  %v3785_v13 = vld [vmem:[#allocation8 + $0x28] sm:$0xff]  }
 0x234   :  { %v2032_v33 = vmax.f32 %v3241_v25, 0.0  ;;  %v2034_v34 = vmax.f32 %v3245_v26, 0.0  ;;  %3199 = vmatpush3.bf16.msra.mxu1 %v3785_v13  ;;  %v3786_v14 = vld [vmem:[#allocation8 + $0x70] sm:$0xff]   ;;  %v3789_v17 = vld [vmem:[#allocation8 + $0x38] sm:$0xff]   ;;  %v3950_v18 = vmov 0.0   ;;  %v2109_v20 = vrot.slane %v2104_v19, %v386_v6 }
 0x235   :  { %v2033_v37 = vmax.f32 %v3242_v29, 0.0  ;;  %v2035_v38 = vmax.f32 %v3246_v30, 0.0  ;;  %3200 = vmatprep.subr.bf16.mxu1 %v3786_v14  ;;  %v2113_v21 = vrot.slane %v2104_v19, %v390_v9  ;;  %v3792_v6 = vld [vmem:[#allocation10 + $0x10] sm:$0xff]   ;;  %v3793_v9 = vld [vmem:[#allocation10 + $0x18] sm:$0xff]  }
 0x236   :  { %v2036_v39 = vpack.c.bf16 %v2032_v33, %v2028_v31  ;;  %v4086_v40 = vpack.c.bf16 %v2034_v34, %v2030_v32 }
 0x237   :  { %v2037_v41 = vpack.c.bf16 %v2033_v37, %v2029_v35  ;;  %v2039_v42 = vpack.c.bf16 %v2035_v38, %v2031_v36  ;;  %v3790_v36 = vld [vmem:[#allocation10] sm:$0xff]   ;;  %v3795_v38 = vld [vmem:[#allocation10 + $0x28] sm:$0xff]  }
 0x238   :  { %3201 = vmatpush3.bf16.msra.mxu1 %v3787_v15  ;;  %v3794_v37 = vld [vmem:[#allocation10 + $0x20] sm:$0xff]  }
 0x239   :  { %2468 = vmatprep.mubr.bf16.mxu0 %v2037_v41  ;;  %3202 = vmatprep.subr.bf16.mxu1 %v3788_v16 }
 0x23a   :  { %2469 = vmatmul.mubr.bf16.vlgmr.msra.gmra.mrb[4].mxu0 %v2036_v39  ;;  %v3796_v39 = vld [vmem:[#allocation10 + $0x30] sm:$0xff]  }
 0x23b   :  { %2480 = vmatpush1.bf16.msra.mxu0 %v3726_v43  ;;  %2511 = vmatprep.mubr.bf16.mxu0 %v2039_v42  ;;  %v3162_v42 = vld [vmem:[%s4123_s6] ss:$0 sm:$0xff]  ;;  %s3952_s6 = smov [#allocation11]  }
 0x23c   :  { %2481 = vmatprep.subr.bf16.mxu0 %v3731_v44  ;;  %3203 = vmatpush3.bf16.msra.mxu1 %v3789_v17  ;;  %s2828_s1 = sshll.u32 %s3952_s6, 4  ;;  %s2829_s1 = int_to_ptr.vmem [resolvable:$true] %s2828_s1 }
 0x23d   :  { %3219 = vmatprep.subr.bf16.mxu1 %v3950_v18  ;;  %s3908_s15 = scalar_lea.vmem %s2829_s1, 256  ;;  %p3913_p13 = scmp.lt.s32.totalorder %s2829_s1, %s2829_s1 }
 0x23e   :  { %p3909_p12 = scmp.ne.s32.totalorder %s2829_s1, %s3908_s15  ;;  %p3914_p0 = scmp.lt.s32.totalorder %s3908_s15, %s3908_s15 }
 0x23f   :  { %2482 = vmatpush1.bf16.msra.mxu0 %v3729_v45 }
 0x240   :  { %2483 = vmatprep.subr.bf16.mxu0 %v3734_v46  ;;  %p3915_p1 = por %p3914_p0, %p3913_p13 }
 0x242   :  { %p3916_p2 = pnand %p3915_p1, %p3909_p12 }
 0x243   :  { %2484 = vmatpush1.bf16.msra.mxu0 %v3732_v47 }
 0x244   :  { %2485 = vmatprep.subr.bf16.mxu0 %v3737_v48 }
 0x247   :  { %2486 = vmatpush1.bf16.msra.mxu0 %v3735_v49 }
 0x248   :  { %2487 = vmatprep.subr.bf16.mxu0 %v3740_v50 }
 0x24b   :  { %2488 = vmatpush1.bf16.msra.mxu0 %v3738_v51 }
 0x24c   :  { %2489 = vmatprep.subr.bf16.mxu0 %v3743_v52 }
 0x24f   :  { %2490 = vmatpush1.bf16.msra.mxu0 %v3741_v53  ;;  %v3179_v53 = vld [vmem:[%s4125_s8] ss:$0 sm:$0xff] }
 0x250   :  { %2491 = vmatprep.subr.bf16.mxu0 %v3746_v54 }
 0x253   :  { %2492 = vmatpush1.bf16.msra.mxu0 %v3744_v55 }
 0x254   :  { %2493 = vmatprep.subr.bf16.mxu0 %v3749_v56 }
 0x257   :  { %2494 = vmatpush1.bf16.msra.mxu0 %v3747_v57 }
 0x258   :  { %2495 = vmatprep.subr.bf16.mxu0 %v3752_v58 }
 0x25b   :  { %2496 = vmatpush1.bf16.msra.mxu0 %v3750_v59 }
 0x25c   :  { %2497 = vmatprep.subr.bf16.mxu0 %v3755_v60 }
 0x25f   :  { %2498 = vmatpush1.bf16.msra.mxu0 %v3753_v61 }
 0x260   :  { %2499 = vmatprep.subr.bf16.mxu0 %v3758_v62 }
 0x263   :  { %2500 = vmatpush1.bf16.msra.mxu0 %v3756_v63 }
 0x264   :  { %2501 = vmatprep.subr.bf16.mxu0 %v3761_v0 }
 0x267   :  { %2502 = vmatpush1.bf16.msra.mxu0 %v3759_v1 }
 0x268   :  { %2503 = vmatprep.subr.bf16.mxu0 %v3764_v2 }
 0x26b   :  { %2504 = vmatpush1.bf16.msra.mxu0 %v3762_v3 }
 0x26c   :  { %2505 = vmatprep.subr.bf16.mxu0 %v3767_v4 }
 0x26f   :  { %2506 = vmatpush1.bf16.msra.mxu0 %v3765_v7 }
 0x270   :  { %2507 = vmatprep.subr.bf16.mxu0 %v3770_v8 }
 0x273   :  { %2508 = vmatpush1.bf16.msra.mxu0 %v3768_v10 }
 0x274   :  { %2509 = vmatprep.subr.bf16.mxu0 %v3773_v11 }
 0x277   :  { %2510 = vmatpush1.bf16.msra.mxu0 %v3771_v12 }
 0x27a   :  { %2512 = vmatmul.mubr.bf16.vlgmr.msra.gmra.mrb[4].mxu0 %v4086_v40  ;;  %v3797_v40 = vld [vmem:[#allocation10 + $0x38] sm:$0xff]  }
 0x34d   :  { %v2513_v22 = vpop.f32.mrb[4].mxu0 }
 0x34e   :  { %v3247_v23 = vadd.f32 %v2513_v22, %v2109_v20  ;;  %v2515_v24 = vpop.f32.mrb[5].mxu0 }
 0x34f   :  { %v3248_v25 = vadd.f32 %v2515_v24, %v2113_v21  ;;  %v2517_v26 = vpop.f32.mrb[6].mxu0 }
 0x350   :  { %v3249_v27 = vadd.f32 %v2517_v26, %v2109_v20  ;;  %v2519_v28 = vpop.f32.mrb[7].mxu0  ;;  %v2522_v30 = vmax.f32 %v3247_v23, 0.0 }
 0x351   :  { %v3250_v29 = vadd.f32 %v2519_v28, %v2113_v21  ;;  %v2523_v32 = vmax.f32 %v3248_v25, 0.0 }
 0x352   :  { %v2524_v31 = vmax.f32 %v3249_v27, 0.0 }
 0x353   :  { %v2525_v33 = vmax.f32 %v3250_v29, 0.0 }
 0x354   :  { %v2526_v34 = vpack.c.bf16 %v2524_v31, %v2522_v30 }
 0x355   :  { %v2527_v35 = vpack.c.bf16 %v2525_v33, %v2523_v32 }
 0x357   :  { %2695 = vmatprep.mubr.bf16.mxu1 %v2527_v35 }
 0x358   :  { %2696 = vmatmul.mubr.bf16.vlgmr.msra.gmra.mrb[4].mxu1 %v2526_v34 }
 0x359   :  { %3220 = vmatpush3.bf16.msra.mxu1 %v3790_v36  ;;  %3235 = vmatprep.mubr.msk.bf16.mxu1 %vm3951_vm0, %v3950_v18 }
 0x35a   :  { %3221 = vmatprep.subr.bf16.mxu1 %v3950_v18 }
 0x35d   :  { %3222 = vmatpush3.bf16.msra.mxu1 %v3791_v5 }
 0x35e   :  { %3223 = vmatprep.subr.bf16.mxu1 %v3950_v18 }
 0x361   :  { %3224 = vmatpush3.bf16.msra.mxu1 %v3792_v6 }
 0x362   :  { %3225 = vmatprep.subr.bf16.mxu1 %v3950_v18 }
 0x365   :  { %3226 = vmatpush3.bf16.msra.mxu1 %v3793_v9 }
 0x366   :  { %3227 = vmatprep.subr.bf16.mxu1 %v3950_v18 }
 0x369   :  { %3228 = vmatpush3.bf16.msra.mxu1 %v3794_v37 }
 0x36a   :  { %3229 = vmatprep.subr.bf16.mxu1 %v3950_v18 }
 0x36d   :  { %3230 = vmatpush3.bf16.msra.mxu1 %v3795_v38 }
 0x36e   :  { %3231 = vmatprep.subr.bf16.mxu1 %v3950_v18 }
 0x371   :  { %3232 = vmatpush3.bf16.msra.mxu1 %v3796_v39 }
 0x372   :  { %3233 = vmatprep.subr.bf16.mxu1 %v3950_v18 }
 0x375   :  { %3234 = vmatpush3.bf16.msra.mxu1 %v3797_v40 }
 0x42b   :  { %v3204_v41 = vpop.f32.mrb[4].mxu1 }
 0x42c   :  { %v3205_v43 = vpop.f32.mrb[5].mxu1 }
 0x42d   :  { %v3206_v44 = vadd.f32 %v3205_v43, %v3204_v41  ;;  %v3207_v45 = vpop.f32.mrb[6].mxu1 }
 0x42e   :  { %v3208_v46 = vpop.f32.mrb[7].mxu1 }
 0x42f   :  { %v2698_v47 = vadd.f32 %v3206_v44, %v3162_v42  ;;  %v3209_v48 = vadd.f32 %v3208_v46, %v3207_v45 }
 0x431   :  { %v2701_v49 = vadd.f32 %v3209_v48, %v3162_v42  ;;  %v2704_v50 = vmax.f32 %v2698_v47, 0.0 }
 0x433   :  { %v2705_v51 = vmax.f32 %v2701_v49, 0.0 }
 0x435   :  { %v2706_v52 = vpack.c.bf16 %v2705_v51, %v2704_v50 }
 0x437   :  { %3236 = vmatmul.mubr.bf16.vlgmr.msra.gmra.mrb[8].mxu1 %v2706_v52 }
 0x50a   :  { %v2812_v54 = vpop.f32.mrb[8].mxu1 }
 0x50b   :  { %v2813_v55 = vadd.f32 %v3179_v53, %v2812_v54  ;;  %v3237_v56 = vpop.f32.mrb[9].mxu1 }
 0x50c   :  { %v2815_v57 = vpop.f32.mrb[10].mxu1 }
 0x50d   :  { %v2819_v58 = vmax.f32 %v2813_v55, 0.0  ;;  %v2816_v59 = vadd.f32 %v3179_v53, %v2815_v57  ;;  %v3238_v60 = vpop.f32.mrb[11].mxu1 }
 0x50f   :  { %2821 = vst [vmem:[#allocation11] sm:$0xff] %v2819_v58  ;;  %v2820_v61 = vmax.f32 %v2816_v59, 0.0 }
 0x511   :  { %2822 = vst [vmem:[#allocation11 + $0x8] sm:$0xff] %v2820_v61 }
 0x512   :  { %3919 = shalt.err (!%p3916_p2)
}
 0x513   :  { %s3920_s17 = scalar_lea.hbm %s4126_s9, 256 }
 0x514   :  { %p3921_p3 = scmp.ne.s32.totalorder %s4126_s9, %s3920_s17  ;;  %p3924_p4 = scmp.lt.u32.totalorder %s3920_s17, %s4126_s9 }
 0x516   :  { %p3926_p5 = pnand %p3924_p4, %p3921_p3 }
 0x518   :  { %3929 = shalt.err (!%p3926_p5)
}
 0x519   :  { %2834 = dma.vmem_to_hbm [thread:$0]  %s2829_s1, 256, %s4126_s9, [#allocation4], %s3947_s0, %s3947_s0, %s3948_s26  }
 0x51a   :  { %3936 = dma.done.wait [#allocation4], 256  }
 0x51b   :  { %3937 = vsyncadd [#allocation4], 4294967040 }
 0x51c   :  { %2838 = vsyncpa [#allocation3], 1 }
 0x51d   :  { %2839 = vsyncpa [#allocation6], 1 }
 0x51e   :  { %2840 = vsyncpa [#allocation9], 1 }
 0x51f   :  { %2841 = vsyncpa [#allocation4], 1 }

</bundles_post_ra>
